<compile_context>
chip_gen: v5e
topology: v5e:2x2
jax: 0.10.0
libtpu: 0.0.40
codegen_flags: <defaults>
</compile_context>

<pallas_src>
import functools

import jax
import jax.numpy as jnp
import numpy as np
from jax.experimental import pallas as pl
from jax.experimental.pallas import tpu as pltpu


def _round_up(x, m):
    return (x + m - 1) // m * m


def _conv_bn_relu_kernel(x_ref, w_ref, shift_ref, o_ref, *, kd_total, plane_pad,
                         q_pad):
    """One batch sample per grid step.

    x_ref:     (G_pad, L_pad)          bf16  -- (kh,kw)-shift-stacked flattened input
    w_ref:     (kD, C_out_pad, G_pad)  bf16  -- per-depth-tap weights, BN scale folded
    shift_ref: (C_out_pad, 1)          f32   -- folded BN shift
    o_ref:     (C_out_pad, Q_pad)      f32   -- lane-dense output
    """
    acc = jnp.zeros(o_ref.shape, jnp.float32)
    # Statically unrolled sum over the kD depth taps.  Every rhs slice starts
    # at a multiple of 128 lanes (plane_pad is a multiple of 128) -> aligned.
    for kd in range(kd_total):
        off = kd * plane_pad
        acc += jnp.dot(w_ref[kd], x_ref[:, off:off + q_pad],
                       preferred_element_type=jnp.float32)
    y = acc + shift_ref[...]            # BN shift (scale already folded into weights)
    o_ref[...] = jnp.maximum(y, 0.0).astype(o_ref.dtype)   # ReLU
    # TODO(synk): Dropout(0.2) and nn.Identity are no-ops at inference; omitted.


def simple_conv3d_forward(x, weight, gamma, beta, running_mean, running_var,
                          eps=1e-5):
    """x: (N, C_in, D, H, W) f32; weight: (C_out, C_in, 13, 2, 2) f32."""
    N, C_in, D, H, W = x.shape
    C_out, _, kD, kH, kW = weight.shape
    sD, sH, sW = 2, 1, 1
    pD, pH, pW = 0, 1, 1

    Dp, Hp, Wp = D + 2 * pD, H + 2 * pH, W + 2 * pW
    D_out = (Dp - kD) // sD + 1
    H_out = (Hp - kH) // sH + 1
    W_out = (Wp - kW) // sW + 1
    plane = Hp * Wp
    plane_pad = _round_up(plane, 128)            # lane-aligned plane stride

    # "Sparse-q" output coordinate space (per sample):
    #   q(do, ho, wo) = do*sD*plane_pad + ho*Wp + wo
    # so that the rhs for depth-tap kd is the lane slice starting at kd*plane_pad.
    D_eff = (D_out - 1) * sD + 1
    Q_pad = D_eff * plane_pad                    # multiple of 128 by construction
    Dp_eff = max(Dp, D_eff + kD - 1)             # depth extent the last tap slice needs
    L_pad = Dp_eff * plane_pad

    # ---- fold eval-mode BatchNorm3d into per-channel scale / shift ----
    scale = gamma / jnp.sqrt(running_var + eps)          # (C_out,)
    shift = beta - running_mean * scale                  # (C_out,)

    # ---- input: pad H/W, stack the kH*kW in-plane shifts onto channels ----
    xp = jnp.pad(x, ((0, 0), (0, 0), (pD, pD), (pH, pH), (pW, pW)))
    x_flat = xp.reshape(N, C_in, Dp, plane)
    groups = []
    for kh in range(kH):
        for kw in range(kW):
            sft = kh * Wp + kw
            g = x_flat[:, :, :, sft:]
            g = jnp.pad(g, ((0, 0), (0, 0), (0, 0), (0, sft)))
            groups.append(g)
    xg = jnp.concatenate(groups, axis=1)                 # (N, kH*kW*C_in, Dp, plane)
    G = kH * kW * C_in
    G_pad = _round_up(G, 8)
    xg = jnp.pad(xg, ((0, 0), (0, G_pad - G), (0, Dp_eff - Dp),
                      (0, plane_pad - plane)))
    xg = xg.reshape(N, G_pad, L_pad).astype(jnp.bfloat16)   # bf16 MXU operands

    # ---- weights: fold BN scale, reorder to (kD, C_out_pad, G_pad), bf16 ----
    C_out_pad = _round_up(C_out, 8)
    w_scaled = weight * scale[:, None, None, None, None]     # (C_out,C_in,kD,kH,kW)
    # target layout: [kd, co, (kh*kW + kw)*C_in + ci]
    w_taps = w_scaled.transpose(2, 0, 3, 4, 1).reshape(kD, C_out, kH * kW * C_in)
    w_taps = jnp.pad(w_taps, ((0, 0), (0, C_out_pad - C_out), (0, G_pad - G)))
    w_taps = w_taps.astype(jnp.bfloat16)

    shift_pad = jnp.pad(shift, (0, C_out_pad - C_out)).reshape(C_out_pad, 1)
    shift_pad = shift_pad.astype(jnp.float32)

    kernel = functools.partial(_conv_bn_relu_kernel, kd_total=kD,
                               plane_pad=plane_pad, q_pad=Q_pad)

    y = pl.pallas_call(
        kernel,
        out_shape=jax.ShapeDtypeStruct((N, C_out_pad, Q_pad), jnp.float32),
        grid=(N,),
        in_specs=[
            pl.BlockSpec((None, G_pad, L_pad), lambda n: (n, 0, 0)),     # x (per sample)
            pl.BlockSpec((kD, C_out_pad, G_pad), lambda n: (0, 0, 0)),   # weights
            pl.BlockSpec((C_out_pad, 1), lambda n: (0, 0)),              # BN shift
        ],
        out_specs=pl.BlockSpec((None, C_out_pad, Q_pad), lambda n: (n, 0, 0)),
        compiler_params=pltpu.CompilerParams(
            dimension_semantics=("parallel",)),
    )(xg, w_taps, shift_pad)

    # ---- gather valid output columns (cheap strided slices on a tiny array) ----
    y = y[:, :C_out, :].reshape(N, C_out, D_eff, plane_pad)
    y = y[:, :, ::sD, :plane].reshape(N, C_out, D_out, Hp, Wp)
    out = y[:, :, :, :H_out, :W_out]                     # (N, C_out, D_out, H_out, W_out)
    return out


if __name__ == "__main__":
    # Small shapes consistent with the module.
    hidden_size_3d = 32
    hid = hidden_size_3d // 16 + 1            # = 3  (C_out)
    N, D, H, W = 2, 15, 8, 8                  # D=15 -> D_out = (15-13)//2 + 1 = 2

    key = jax.random.PRNGKey(0)
    k_x, k_w, k_g, k_b, k_m, k_v = jax.random.split(key, 6)

    x = jax.random.normal(k_x, (N, hidden_size_3d, D, H, W), dtype=jnp.float32)
    weight = jax.random.normal(k_w, (hid, hidden_size_3d, 13, 2, 2),
                               dtype=jnp.float32) * 0.05
    gamma = 1.0 + 0.1 * jax.random.normal(k_g, (hid,), dtype=jnp.float32)
    beta = 0.1 * jax.random.normal(k_b, (hid,), dtype=jnp.float32)
    running_mean = 0.1 * jax.random.normal(k_m, (hid,), dtype=jnp.float32)
    running_var = 1.0 + 0.1 * jax.nn.softplus(
        jax.random.normal(k_v, (hid,), dtype=jnp.float32))

    fwd = jax.jit(simple_conv3d_forward)
    out = fwd(x, weight, gamma, beta, running_mean, running_var)
    out = jax.block_until_ready(out)
    assert out.shape == (N, hid, 2, H + 1, W + 1), out.shape

    eps = 1e-5
    scale = gamma / jnp.sqrt(running_var + eps)
    shift = beta - running_mean * scale

    # Tight check: reference built from the same bf16-rounded operands
    # (kernel accumulates exact bf16 products in f32 -> only summation order differs).
    x_bf = x.astype(jnp.bfloat16).astype(jnp.float32)
    w_folded_bf = (weight * scale[:, None, None, None, None]
                   ).astype(jnp.bfloat16).astype(jnp.float32)
    ref_conv_bf = jax.lax.conv_general_dilated(
        x_bf, w_folded_bf, window_strides=(2, 1, 1),
        padding=((0, 0), (1, 1), (1, 1)),
        dimension_numbers=("NCDHW", "OIDHW", "NCDHW"),
        precision=jax.lax.Precision.HIGHEST)
    ref_tight = jnp.maximum(ref_conv_bf + shift.reshape(1, hid, 1, 1, 1), 0.0)
    np.testing.assert_allclose(np.asarray(out), np.asarray(ref_tight),
                               rtol=2e-3, atol=2e-3)

    # Loose check against the pure-f32 module semantics (bf16 operand rounding).
    ref_conv = jax.lax.conv_general_dilated(
        x, weight, window_strides=(2, 1, 1),
        padding=((0, 0), (1, 1), (1, 1)),
        dimension_numbers=("NCDHW", "OIDHW", "NCDHW"),
        precision=jax.lax.Precision.HIGHEST)
    ref = jnp.maximum(ref_conv * scale.reshape(1, hid, 1, 1, 1)
                      + shift.reshape(1, hid, 1, 1, 1), 0.0)
    np.testing.assert_allclose(np.asarray(out), np.asarray(ref),
                               rtol=1e-1, atol=1e-1)

    print("KERNEL_OK")
</pallas_src>

<mosaic_0001>
module attributes {stable_mosaic.version = 11 : i64} {
  func.func @_conv_bn_relu_kernel(%arg0: i32, %arg1: memref<1x128x1920xbf16, #tpu.memory_space<vmem>>, %arg2: memref<13x8x128xbf16, #tpu.memory_space<vmem>>, %arg3: memref<8x1xf32, #tpu.memory_space<vmem>>, %arg4: memref<1x8x384xf32, #tpu.memory_space<vmem>>) attributes {dimension_semantics = [#tpu.dimension_semantics<parallel>], iteration_bounds = array<i64: 2>, scalar_prefetch = 0 : i64, scratch_operands = 0 : i64, tpu.core_type = #tpu.core_type<tc>, window_params = [{transform_indices = @transform_0, window_bounds = array<i64: 1, 128, 1920>}, {pipeline_mode = #tpu.pipeline_mode<synchronous>, transform_indices = @transform_1, window_bounds = array<i64: 13, 8, 128>}, {pipeline_mode = #tpu.pipeline_mode<synchronous>, transform_indices = @transform_2, window_bounds = array<i64: 8, 1>}, {transform_indices = @transform_3, window_bounds = array<i64: 1, 8, 384>}]} {
    %cst = arith.constant 0.000000e+00 : f32
    %0 = vector.broadcast %cst : f32 to vector<8x384xf32>
    %c0 = arith.constant 0 : index
    %c0_0 = arith.constant 0 : index
    %c0_1 = arith.constant 0 : index
    %1 = vector.load %arg2[%c0, %c0_0, %c0_1] : memref<13x8x128xbf16, #tpu.memory_space<vmem>>, vector<1x8x128xbf16>
    %2 = vector.shape_cast %1 : vector<1x8x128xbf16> to vector<8x128xbf16>
    %c0_2 = arith.constant 0 : index
    %c0_3 = arith.constant 0 : index
    %c0_4 = arith.constant 0 : index
    %3 = vector.load %arg1[%c0_2, %c0_3, %c0_4] : memref<1x128x1920xbf16, #tpu.memory_space<vmem>>, vector<1x128x384xbf16>
    %4 = vector.shape_cast %3 : vector<1x128x384xbf16> to vector<128x384xbf16>
    %cst_5 = arith.constant dense<0.000000e+00> : vector<8x384xf32>
    %5 = tpu.matmul %2, %4, %cst_5 {dimension_numbers = #tpu.dot_dimension_numbers<[1], [0], [0], [1], [0, 0, 1, 1], [], []>} : vector<8x128xbf16>, vector<128x384xbf16>, vector<8x384xf32> -> vector<8x384xf32>
    %6 = arith.addf %0, %5 : vector<8x384xf32>
    %c1 = arith.constant 1 : index
    %c0_6 = arith.constant 0 : index
    %c0_7 = arith.constant 0 : index
    %7 = vector.load %arg2[%c1, %c0_6, %c0_7] : memref<13x8x128xbf16, #tpu.memory_space<vmem>>, vector<1x8x128xbf16>
    %8 = vector.shape_cast %7 : vector<1x8x128xbf16> to vector<8x128xbf16>
    %c0_8 = arith.constant 0 : index
    %c0_9 = arith.constant 0 : index
    %c128 = arith.constant 128 : index
    %9 = vector.load %arg1[%c0_8, %c0_9, %c128] : memref<1x128x1920xbf16, #tpu.memory_space<vmem>>, vector<1x128x384xbf16>
    %10 = vector.shape_cast %9 : vector<1x128x384xbf16> to vector<128x384xbf16>
    %cst_10 = arith.constant dense<0.000000e+00> : vector<8x384xf32>
    %11 = tpu.matmul %8, %10, %cst_10 {dimension_numbers = #tpu.dot_dimension_numbers<[1], [0], [0], [1], [0, 0, 1, 1], [], []>} : vector<8x128xbf16>, vector<128x384xbf16>, vector<8x384xf32> -> vector<8x384xf32>
    %12 = arith.addf %6, %11 : vector<8x384xf32>
    %c2 = arith.constant 2 : index
    %c0_11 = arith.constant 0 : index
    %c0_12 = arith.constant 0 : index
    %13 = vector.load %arg2[%c2, %c0_11, %c0_12] : memref<13x8x128xbf16, #tpu.memory_space<vmem>>, vector<1x8x128xbf16>
    %14 = vector.shape_cast %13 : vector<1x8x128xbf16> to vector<8x128xbf16>
    %c0_13 = arith.constant 0 : index
    %c0_14 = arith.constant 0 : index
    %c256 = arith.constant 256 : index
    %15 = vector.load %arg1[%c0_13, %c0_14, %c256] : memref<1x128x1920xbf16, #tpu.memory_space<vmem>>, vector<1x128x384xbf16>
    %16 = vector.shape_cast %15 : vector<1x128x384xbf16> to vector<128x384xbf16>
    %cst_15 = arith.constant dense<0.000000e+00> : vector<8x384xf32>
    %17 = tpu.matmul %14, %16, %cst_15 {dimension_numbers = #tpu.dot_dimension_numbers<[1], [0], [0], [1], [0, 0, 1, 1], [], []>} : vector<8x128xbf16>, vector<128x384xbf16>, vector<8x384xf32> -> vector<8x384xf32>
    %18 = arith.addf %12, %17 : vector<8x384xf32>
    %c3 = arith.constant 3 : index
    %c0_16 = arith.constant 0 : index
    %c0_17 = arith.constant 0 : index
    %19 = vector.load %arg2[%c3, %c0_16, %c0_17] : memref<13x8x128xbf16, #tpu.memory_space<vmem>>, vector<1x8x128xbf16>
    %20 = vector.shape_cast %19 : vector<1x8x128xbf16> to vector<8x128xbf16>
    %c0_18 = arith.constant 0 : index
    %c0_19 = arith.constant 0 : index
    %c384 = arith.constant 384 : index
    %21 = vector.load %arg1[%c0_18, %c0_19, %c384] : memref<1x128x1920xbf16, #tpu.memory_space<vmem>>, vector<1x128x384xbf16>
    %22 = vector.shape_cast %21 : vector<1x128x384xbf16> to vector<128x384xbf16>
    %cst_20 = arith.constant dense<0.000000e+00> : vector<8x384xf32>
    %23 = tpu.matmul %20, %22, %cst_20 {dimension_numbers = #tpu.dot_dimension_numbers<[1], [0], [0], [1], [0, 0, 1, 1], [], []>} : vector<8x128xbf16>, vector<128x384xbf16>, vector<8x384xf32> -> vector<8x384xf32>
    %24 = arith.addf %18, %23 : vector<8x384xf32>
    %c4 = arith.constant 4 : index
    %c0_21 = arith.constant 0 : index
    %c0_22 = arith.constant 0 : index
    %25 = vector.load %arg2[%c4, %c0_21, %c0_22] : memref<13x8x128xbf16, #tpu.memory_space<vmem>>, vector<1x8x128xbf16>
    %26 = vector.shape_cast %25 : vector<1x8x128xbf16> to vector<8x128xbf16>
    %c0_23 = arith.constant 0 : index
    %c0_24 = arith.constant 0 : index
    %c512 = arith.constant 512 : index
    %27 = vector.load %arg1[%c0_23, %c0_24, %c512] : memref<1x128x1920xbf16, #tpu.memory_space<vmem>>, vector<1x128x384xbf16>
    %28 = vector.shape_cast %27 : vector<1x128x384xbf16> to vector<128x384xbf16>
    %cst_25 = arith.constant dense<0.000000e+00> : vector<8x384xf32>
    %29 = tpu.matmul %26, %28, %cst_25 {dimension_numbers = #tpu.dot_dimension_numbers<[1], [0], [0], [1], [0, 0, 1, 1], [], []>} : vector<8x128xbf16>, vector<128x384xbf16>, vector<8x384xf32> -> vector<8x384xf32>
    %30 = arith.addf %24, %29 : vector<8x384xf32>
    %c5 = arith.constant 5 : index
    %c0_26 = arith.constant 0 : index
    %c0_27 = arith.constant 0 : index
    %31 = vector.load %arg2[%c5, %c0_26, %c0_27] : memref<13x8x128xbf16, #tpu.memory_space<vmem>>, vector<1x8x128xbf16>
    %32 = vector.shape_cast %31 : vector<1x8x128xbf16> to vector<8x128xbf16>
    %c0_28 = arith.constant 0 : index
    %c0_29 = arith.constant 0 : index
    %c640 = arith.constant 640 : index
    %33 = vector.load %arg1[%c0_28, %c0_29, %c640] : memref<1x128x1920xbf16, #tpu.memory_space<vmem>>, vector<1x128x384xbf16>
    %34 = vector.shape_cast %33 : vector<1x128x384xbf16> to vector<128x384xbf16>
    %cst_30 = arith.constant dense<0.000000e+00> : vector<8x384xf32>
    %35 = tpu.matmul %32, %34, %cst_30 {dimension_numbers = #tpu.dot_dimension_numbers<[1], [0], [0], [1], [0, 0, 1, 1], [], []>} : vector<8x128xbf16>, vector<128x384xbf16>, vector<8x384xf32> -> vector<8x384xf32>
    %36 = arith.addf %30, %35 : vector<8x384xf32>
    %c6 = arith.constant 6 : index
    %c0_31 = arith.constant 0 : index
    %c0_32 = arith.constant 0 : index
    %37 = vector.load %arg2[%c6, %c0_31, %c0_32] : memref<13x8x128xbf16, #tpu.memory_space<vmem>>, vector<1x8x128xbf16>
    %38 = vector.shape_cast %37 : vector<1x8x128xbf16> to vector<8x128xbf16>
    %c0_33 = arith.constant 0 : index
    %c0_34 = arith.constant 0 : index
    %c768 = arith.constant 768 : index
    %39 = vector.load %arg1[%c0_33, %c0_34, %c768] : memref<1x128x1920xbf16, #tpu.memory_space<vmem>>, vector<1x128x384xbf16>
    %40 = vector.shape_cast %39 : vector<1x128x384xbf16> to vector<128x384xbf16>
    %cst_35 = arith.constant dense<0.000000e+00> : vector<8x384xf32>
    %41 = tpu.matmul %38, %40, %cst_35 {dimension_numbers = #tpu.dot_dimension_numbers<[1], [0], [0], [1], [0, 0, 1, 1], [], []>} : vector<8x128xbf16>, vector<128x384xbf16>, vector<8x384xf32> -> vector<8x384xf32>
    %42 = arith.addf %36, %41 : vector<8x384xf32>
    %c7 = arith.constant 7 : index
    %c0_36 = arith.constant 0 : index
    %c0_37 = arith.constant 0 : index
    %43 = vector.load %arg2[%c7, %c0_36, %c0_37] : memref<13x8x128xbf16, #tpu.memory_space<vmem>>, vector<1x8x128xbf16>
    %44 = vector.shape_cast %43 : vector<1x8x128xbf16> to vector<8x128xbf16>
    %c0_38 = arith.constant 0 : index
    %c0_39 = arith.constant 0 : index
    %c896 = arith.constant 896 : index
    %45 = vector.load %arg1[%c0_38, %c0_39, %c896] : memref<1x128x1920xbf16, #tpu.memory_space<vmem>>, vector<1x128x384xbf16>
    %46 = vector.shape_cast %45 : vector<1x128x384xbf16> to vector<128x384xbf16>
    %cst_40 = arith.constant dense<0.000000e+00> : vector<8x384xf32>
    %47 = tpu.matmul %44, %46, %cst_40 {dimension_numbers = #tpu.dot_dimension_numbers<[1], [0], [0], [1], [0, 0, 1, 1], [], []>} : vector<8x128xbf16>, vector<128x384xbf16>, vector<8x384xf32> -> vector<8x384xf32>
    %48 = arith.addf %42, %47 : vector<8x384xf32>
    %c8 = arith.constant 8 : index
    %c0_41 = arith.constant 0 : index
    %c0_42 = arith.constant 0 : index
    %49 = vector.load %arg2[%c8, %c0_41, %c0_42] : memref<13x8x128xbf16, #tpu.memory_space<vmem>>, vector<1x8x128xbf16>
    %50 = vector.shape_cast %49 : vector<1x8x128xbf16> to vector<8x128xbf16>
    %c0_43 = arith.constant 0 : index
    %c0_44 = arith.constant 0 : index
    %c1024 = arith.constant 1024 : index
    %51 = vector.load %arg1[%c0_43, %c0_44, %c1024] : memref<1x128x1920xbf16, #tpu.memory_space<vmem>>, vector<1x128x384xbf16>
    %52 = vector.shape_cast %51 : vector<1x128x384xbf16> to vector<128x384xbf16>
    %cst_45 = arith.constant dense<0.000000e+00> : vector<8x384xf32>
    %53 = tpu.matmul %50, %52, %cst_45 {dimension_numbers = #tpu.dot_dimension_numbers<[1], [0], [0], [1], [0, 0, 1, 1], [], []>} : vector<8x128xbf16>, vector<128x384xbf16>, vector<8x384xf32> -> vector<8x384xf32>
    %54 = arith.addf %48, %53 : vector<8x384xf32>
    %c9 = arith.constant 9 : index
    %c0_46 = arith.constant 0 : index
    %c0_47 = arith.constant 0 : index
    %55 = vector.load %arg2[%c9, %c0_46, %c0_47] : memref<13x8x128xbf16, #tpu.memory_space<vmem>>, vector<1x8x128xbf16>
    %56 = vector.shape_cast %55 : vector<1x8x128xbf16> to vector<8x128xbf16>
    %c0_48 = arith.constant 0 : index
    %c0_49 = arith.constant 0 : index
    %c1152 = arith.constant 1152 : index
    %57 = vector.load %arg1[%c0_48, %c0_49, %c1152] : memref<1x128x1920xbf16, #tpu.memory_space<vmem>>, vector<1x128x384xbf16>
    %58 = vector.shape_cast %57 : vector<1x128x384xbf16> to vector<128x384xbf16>
    %cst_50 = arith.constant dense<0.000000e+00> : vector<8x384xf32>
    %59 = tpu.matmul %56, %58, %cst_50 {dimension_numbers = #tpu.dot_dimension_numbers<[1], [0], [0], [1], [0, 0, 1, 1], [], []>} : vector<8x128xbf16>, vector<128x384xbf16>, vector<8x384xf32> -> vector<8x384xf32>
    %60 = arith.addf %54, %59 : vector<8x384xf32>
    %c10 = arith.constant 10 : index
    %c0_51 = arith.constant 0 : index
    %c0_52 = arith.constant 0 : index
    %61 = vector.load %arg2[%c10, %c0_51, %c0_52] : memref<13x8x128xbf16, #tpu.memory_space<vmem>>, vector<1x8x128xbf16>
    %62 = vector.shape_cast %61 : vector<1x8x128xbf16> to vector<8x128xbf16>
    %c0_53 = arith.constant 0 : index
    %c0_54 = arith.constant 0 : index
    %c1280 = arith.constant 1280 : index
    %63 = vector.load %arg1[%c0_53, %c0_54, %c1280] : memref<1x128x1920xbf16, #tpu.memory_space<vmem>>, vector<1x128x384xbf16>
    %64 = vector.shape_cast %63 : vector<1x128x384xbf16> to vector<128x384xbf16>
    %cst_55 = arith.constant dense<0.000000e+00> : vector<8x384xf32>
    %65 = tpu.matmul %62, %64, %cst_55 {dimension_numbers = #tpu.dot_dimension_numbers<[1], [0], [0], [1], [0, 0, 1, 1], [], []>} : vector<8x128xbf16>, vector<128x384xbf16>, vector<8x384xf32> -> vector<8x384xf32>
    %66 = arith.addf %60, %65 : vector<8x384xf32>
    %c11 = arith.constant 11 : index
    %c0_56 = arith.constant 0 : index
    %c0_57 = arith.constant 0 : index
    %67 = vector.load %arg2[%c11, %c0_56, %c0_57] : memref<13x8x128xbf16, #tpu.memory_space<vmem>>, vector<1x8x128xbf16>
    %68 = vector.shape_cast %67 : vector<1x8x128xbf16> to vector<8x128xbf16>
    %c0_58 = arith.constant 0 : index
    %c0_59 = arith.constant 0 : index
    %c1408 = arith.constant 1408 : index
    %69 = vector.load %arg1[%c0_58, %c0_59, %c1408] : memref<1x128x1920xbf16, #tpu.memory_space<vmem>>, vector<1x128x384xbf16>
    %70 = vector.shape_cast %69 : vector<1x128x384xbf16> to vector<128x384xbf16>
    %cst_60 = arith.constant dense<0.000000e+00> : vector<8x384xf32>
    %71 = tpu.matmul %68, %70, %cst_60 {dimension_numbers = #tpu.dot_dimension_numbers<[1], [0], [0], [1], [0, 0, 1, 1], [], []>} : vector<8x128xbf16>, vector<128x384xbf16>, vector<8x384xf32> -> vector<8x384xf32>
    %72 = arith.addf %66, %71 : vector<8x384xf32>
    %c12 = arith.constant 12 : index
    %c0_61 = arith.constant 0 : index
    %c0_62 = arith.constant 0 : index
    %73 = vector.load %arg2[%c12, %c0_61, %c0_62] : memref<13x8x128xbf16, #tpu.memory_space<vmem>>, vector<1x8x128xbf16>
    %74 = vector.shape_cast %73 : vector<1x8x128xbf16> to vector<8x128xbf16>
    %c0_63 = arith.constant 0 : index
    %c0_64 = arith.constant 0 : index
    %c1536 = arith.constant 1536 : index
    %75 = vector.load %arg1[%c0_63, %c0_64, %c1536] : memref<1x128x1920xbf16, #tpu.memory_space<vmem>>, vector<1x128x384xbf16>
    %76 = vector.shape_cast %75 : vector<1x128x384xbf16> to vector<128x384xbf16>
    %cst_65 = arith.constant dense<0.000000e+00> : vector<8x384xf32>
    %77 = tpu.matmul %74, %76, %cst_65 {dimension_numbers = #tpu.dot_dimension_numbers<[1], [0], [0], [1], [0, 0, 1, 1], [], []>} : vector<8x128xbf16>, vector<128x384xbf16>, vector<8x384xf32> -> vector<8x384xf32>
    %78 = arith.addf %72, %77 : vector<8x384xf32>
    %c0_66 = arith.constant 0 : index
    %c0_67 = arith.constant 0 : index
    %79 = vector.load %arg3[%c0_66, %c0_67] : memref<8x1xf32, #tpu.memory_space<vmem>>, vector<8x1xf32>
    %80 = vector.broadcast %79 : vector<8x1xf32> to vector<8x384xf32>
    %81 = arith.addf %78, %80 : vector<8x384xf32>
    %cst_68 = arith.constant 0.000000e+00 : f32
    %82 = vector.broadcast %cst_68 : f32 to vector<8x384xf32>
    %83 = arith.maximumf %81, %82 : vector<8x384xf32>
    %c0_69 = arith.constant 0 : index
    %c0_70 = arith.constant 0 : index
    %c0_71 = arith.constant 0 : index
    %84 = vector.load %arg4[%c0_69, %c0_70, %c0_71] : memref<1x8x384xf32, #tpu.memory_space<vmem>>, vector<1x8x384xf32>
    %85 = vector.shape_cast %84 : vector<1x8x384xf32> to vector<8x384xf32>
    %86 = vector.shape_cast %83 : vector<8x384xf32> to vector<1x8x384xf32>
    tpu.vector_store %arg4[%c0_69, %c0_70, %c0_71], %86 {strides = array<i32>} : memref<1x8x384xf32, #tpu.memory_space<vmem>>, vector<1x8x384xf32>,
    return
  }
  func.func @transform_0(%arg0: i32) -> (i32, i32, i32) {
    %c0_i32 = arith.constant 0 : i32
    %c0_i32_0 = arith.constant 0 : i32
    %c0_i32_1 = arith.constant 0 : i32
    return %arg0, %c0_i32, %c0_i32_0 : i32, i32, i32
  }
  func.func @transform_1(%arg0: i32) -> (i32, i32, i32) {
    %c0_i32 = arith.constant 0 : i32
    %c0_i32_0 = arith.constant 0 : i32
    %c0_i32_1 = arith.constant 0 : i32
    %c0_i32_2 = arith.constant 0 : i32
    return %c0_i32, %c0_i32_0, %c0_i32_1 : i32, i32, i32
  }
  func.func @transform_2(%arg0: i32) -> (i32, i32) {
    %c0_i32 = arith.constant 0 : i32
    %c0_i32_0 = arith.constant 0 : i32
    %c0_i32_1 = arith.constant 0 : i32
    return %c0_i32, %c0_i32_0 : i32, i32
  }
  func.func @transform_3(%arg0: i32) -> (i32, i32, i32) {
    %c0_i32 = arith.constant 0 : i32
    %c0_i32_0 = arith.constant 0 : i32
    %c0_i32_1 = arith.constant 0 : i32
    return %arg0, %c0_i32, %c0_i32_0 : i32, i32, i32
  }
}

</mosaic_0001>

<bundles_post_ra>
// kernel: simple_conv3d_forward.1
= control target key start
LH: loop header
LB: loop body
LE: loop exit
PB: predicated region body
PF: predicated region fallthrough
CT: control target
= control target key end

     0   :  { %s4508_s12 = smov 0   ;;  %s5266_s0 = inlined_call_operand.vmem [shape: bf16[2,128,1920], index: 0, kind: input, shape index: {}]   ;;  %s5267_s1 = inlined_call_operand.vmem [shape: bf16[13,8,128], index: 1, kind: input, shape index: {}]   ;;  %s5268_s2 = inlined_call_operand.vmem [shape: f32[8,1], index: 2, kind: input, shape index: {}]   ;;  %s5269_s3 = inlined_call_operand.vmem [shape: f32[2,8,384], index: 3, kind: output, shape index: {}]  }
   0x1 LB: > { %s2886_s13 = sadd.s32 4294967295, %s4485_s12   ;;  %p2890_p0 = scmp.ge.s32.totalorder %s4485_s12, 1  ;;  %s4485_s12 = sphi %s4508_s12, %s13_s12  }
   0x2   : > { %p137_p1 = scmp.lt.s32.totalorder %s4485_s12, 3 }
   0x4   : > { %p138_p2 = pnand %p2890_p0, %p137_p1 }
   0x5   : > { %p161_p3 = scmp.lt.s32.totalorder (!%p138_p2), %s2886_s13, 1 }
   0x6   : > { %141 = sbr.rel (%p138_p2) target bundleno = 478 (0x1de), region = 32 }
   0xb   : > { %s5271_s13 = smov (!%p161_p3, %s2886_s13), 1 }
   0xc   : > { %s4467_s14 = smul.u32 960, %s5271_s13 }
   0xe   : > { %s4522_s17 = scalar_lea.vmem %s5266_s0, %s4467_s14 }
   0xf   : > { %v2980_v0 = vld [vmem:[%s4522_s17 + $0x34c] sm:$0xf]  ;;  %v4201_v1 = vld [vmem:[%s4522_s17 + $0x384] sm:$0xf0]  ;;  %v4200_v2 = vld [vmem:[%s4522_s17 + $0x350] sm:$0xf] }
  0x10   : > { %v2981_v3 = vor.u32 %v4201_v1, %v2980_v0  ;;  %v2982_v4 = vld [vmem:[%s4522_s17 + $0x388] sm:$0xf0]  ;;  %v2988_v5 = vld [vmem:[%s4522_s17 + $0x354] sm:$0xf]  ;;  %v4202_v6 = vld [vmem:[%s4522_s17 + $0x38c] sm:$0xf0] }
  0x11   : > { %v2985_v7 = vor.u32 %v4200_v2, %v2982_v4  ;;  %v2989_v8 = vor.u32 %v4202_v6, %v2988_v5  ;;  %v3076_v9 = vld [vmem:[%s4522_s17 + $0x348] sm:$0xf]  ;;  %v4177_v10 = vld [vmem:[%s4522_s17 + $0x380] sm:$0xf0]  ;;  %v2968_v11 = vld [vmem:[%s4522_s17 + $0x2d4] sm:$0xf] }
  0x12   : > { %366 = vmatpush.bf16.msra.mxu0 %v2981_v3  ;;  %v3077_v12 = vor.u32 %v4177_v10, %v3076_v9  ;;  %v4198_v13 = vld [vmem:[%s4522_s17 + $0x30c] sm:$0xf0]  ;;  %v4197_v14 = vld [vmem:[%s4522_s17 + $0x2d8] sm:$0xf]  ;;  %v2970_v15 = vld [vmem:[%s4522_s17 + $0x310] sm:$0xf0] }
  0x13   : > { %379 = vmatpush.bf16.msra.mxu1 %v2985_v7  ;;  %392 = vmatpush.bf16.msra.mxu2 %v2989_v8  ;;  %v2969_v16 = vor.u32 %v4198_v13, %v2968_v11  ;;  %v2973_v17 = vor.u32 %v4197_v14, %v2970_v15  ;;  %v2976_v18 = vld [vmem:[%s4522_s17 + $0x2dc] sm:$0xf]  ;;  %v4199_v19 = vld [vmem:[%s4522_s17 + $0x314] sm:$0xf0]  ;;  %v3064_v20 = vld [vmem:[%s4522_s17 + $0x2d0] sm:$0xf] }
  0x14   : > { %533 = vmatpush.bf16.msra.mxu3 %v3077_v12  ;;  %v2977_v21 = vor.u32 %v4199_v19, %v2976_v18  ;;  %v4174_v22 = vld [vmem:[%s4522_s17 + $0x308] sm:$0xf0]  ;;  %v2956_v23 = vld [vmem:[%s4522_s17 + $0x25c] sm:$0xf]  ;;  %v4195_v24 = vld [vmem:[%s4522_s17 + $0x294] sm:$0xf0] }
  0x15   : > { %v3065_v25 = vor.u32 %v4174_v22, %v3064_v20  ;;  %v4194_v26 = vld [vmem:[%s4522_s17 + $0x260] sm:$0xf]  ;;  %v2958_v27 = vld [vmem:[%s4522_s17 + $0x298] sm:$0xf0]  ;;  %v2964_v28 = vld [vmem:[%s4522_s17 + $0x264] sm:$0xf]  ;;  %v2957_v29 = vor.u32 %v4195_v24, %v2956_v23 }
  0x16   : > { %367 = vmatpush.bf16.msra.mxu0 %v2969_v16  ;;  %v4196_v30 = vld [vmem:[%s4522_s17 + $0x29c] sm:$0xf0]  ;;  %v3052_v31 = vld [vmem:[%s4522_s17 + $0x258] sm:$0xf]  ;;  %v4171_v32 = vld [vmem:[%s4522_s17 + $0x290] sm:$0xf0]  ;;  %v2961_v33 = vor.u32 %v4194_v26, %v2958_v27 }
  0x17   : > { %380 = vmatpush.bf16.msra.mxu1 %v2973_v17  ;;  %393 = vmatpush.bf16.msra.mxu2 %v2977_v21  ;;  %v2965_v34 = vor.u32 %v4196_v30, %v2964_v28  ;;  %v2944_v35 = vld [vmem:[%s4522_s17 + $0x1e4] sm:$0xf]  ;;  %v4192_v36 = vld [vmem:[%s4522_s17 + $0x21c] sm:$0xf0]  ;;  %v4191_v37 = vld [vmem:[%s4522_s17 + $0x1e8] sm:$0xf]  ;;  %v3053_v38 = vor.u32 %v4171_v32, %v3052_v31 }
  0x18   : > { %534 = vmatpush.bf16.msra.mxu3 %v3065_v25  ;;  %v2946_v39 = vld [vmem:[%s4522_s17 + $0x220] sm:$0xf0]  ;;  %v2952_v40 = vld [vmem:[%s4522_s17 + $0x1ec] sm:$0xf]  ;;  %v4193_v41 = vld [vmem:[%s4522_s17 + $0x224] sm:$0xf0]  ;;  %v2945_v44 = vor.u32 %v4192_v36, %v2944_v35 }
  0x19   : > { %v3040_v42 = vld [vmem:[%s4522_s17 + $0x1e0] sm:$0xf]  ;;  %v4168_v43 = vld [vmem:[%s4522_s17 + $0x218] sm:$0xf0]  ;;  %v2949_v45 = vor.u32 %v4191_v37, %v2946_v39  ;;  %v2953_v46 = vor.u32 %v4193_v41, %v2952_v40  ;;  %v2932_v47 = vld [vmem:[%s4522_s17 + $0x16c] sm:$0xf] }
  0x1a   : > { %368 = vmatpush.bf16.msra.mxu0 %v2957_v29  ;;  %v4189_v48 = vld [vmem:[%s4522_s17 + $0x1a4] sm:$0xf0]  ;;  %v4188_v49 = vld [vmem:[%s4522_s17 + $0x170] sm:$0xf]  ;;  %v3041_v50 = vor.u32 %v4168_v43, %v3040_v42  ;;  %v2934_v51 = vld [vmem:[%s4522_s17 + $0x1a8] sm:$0xf0] }
  0x1b   : > { %381 = vmatpush.bf16.msra.mxu1 %v2961_v33  ;;  %394 = vmatpush.bf16.msra.mxu2 %v2965_v34  ;;  %v2940_v52 = vld [vmem:[%s4522_s17 + $0x174] sm:$0xf]  ;;  %v4190_v53 = vld [vmem:[%s4522_s17 + $0x1ac] sm:$0xf0]  ;;  %v3028_v54 = vld [vmem:[%s4522_s17 + $0x168] sm:$0xf]  ;;  %v2933_v56 = vor.u32 %v4189_v48, %v2932_v47  ;;  %v2937_v57 = vor.u32 %v4188_v49, %v2934_v51 }
  0x1c   : > { %535 = vmatpush.bf16.msra.mxu3 %v3053_v38  ;;  %v4165_v55 = vld [vmem:[%s4522_s17 + $0x1a0] sm:$0xf0]  ;;  %v2941_v58 = vor.u32 %v4190_v53, %v2940_v52  ;;  %v2920_v59 = vld [vmem:[%s4522_s17 + $0xf4] sm:$0xf]  ;;  %v4186_v60 = vld [vmem:[%s4522_s17 + $0x12c] sm:$0xf0] }
  0x1d   : > { %v4185_v61 = vld [vmem:[%s4522_s17 + $0xf8] sm:$0xf]  ;;  %v3029_v62 = vor.u32 %v4165_v55, %v3028_v54  ;;  %v2922_v63 = vld [vmem:[%s4522_s17 + $0x130] sm:$0xf0]  ;;  %v2928_v0 = vld [vmem:[%s4522_s17 + $0xfc] sm:$0xf]  ;;  %v2921_v4 = vor.u32 %v4186_v60, %v2920_v59 }
  0x1e   : > { %369 = vmatpush.bf16.msra.mxu0 %v2945_v44  ;;  %v4187_v1 = vld [vmem:[%s4522_s17 + $0x134] sm:$0xf0]  ;;  %v3016_v2 = vld [vmem:[%s4522_s17 + $0xf0] sm:$0xf]  ;;  %v4162_v3 = vld [vmem:[%s4522_s17 + $0x128] sm:$0xf0]  ;;  %v2925_v5 = vor.u32 %v4185_v61, %v2922_v63 }
  0x1f   : > { %382 = vmatpush.bf16.msra.mxu1 %v2949_v45  ;;  %395 = vmatpush.bf16.msra.mxu2 %v2953_v46  ;;  %v2929_v6 = vor.u32 %v4187_v1, %v2928_v0  ;;  %v2908_v7 = vld [vmem:[%s4522_s17 + $0x7c] sm:$0xf]  ;;  %v4183_v8 = vld [vmem:[%s4522_s17 + $0xb4] sm:$0xf0]  ;;  %v4182_v9 = vld [vmem:[%s4522_s17 + $0x80] sm:$0xf]  ;;  %v3017_v10 = vor.u32 %v4162_v3, %v3016_v2 }
  0x20   : > { %536 = vmatpush.bf16.msra.mxu3 %v3041_v50  ;;  %v2910_v11 = vld [vmem:[%s4522_s17 + $0xb8] sm:$0xf0]  ;;  %v2916_v12 = vld [vmem:[%s4522_s17 + $0x84] sm:$0xf]  ;;  %v4184_v13 = vld [vmem:[%s4522_s17 + $0xbc] sm:$0xf0]  ;;  %v2909_v16 = vor.u32 %v4183_v8, %v2908_v7 }
  0x21   : > { %v3004_v14 = vld [vmem:[%s4522_s17 + $0x78] sm:$0xf]  ;;  %v4159_v15 = vld [vmem:[%s4522_s17 + $0xb0] sm:$0xf0]  ;;  %v2896_v17 = vld [vmem:[%s4522_s17 + $0x4] sm:$0xf]  ;;  %v2913_v19 = vor.u32 %v4182_v9, %v2910_v11  ;;  %v2917_v20 = vor.u32 %v4184_v13, %v2916_v12 }
  0x22   : > { %370 = vmatpush.bf16.msra.mxu0 %v2933_v56  ;;  %v4180_v18 = vld [vmem:[%s4522_s17 + $0x3c] sm:$0xf0]  ;;  %v4179_v21 = vld [vmem:[%s4522_s17 + $0x8] sm:$0xf]  ;;  %v2898_v22 = vld [vmem:[%s4522_s17 + $0x40] sm:$0xf0]  ;;  %v3005_v24 = vor.u32 %v4159_v15, %v3004_v14 }
  0x23   : > { %383 = vmatpush.bf16.msra.mxu1 %v2937_v57  ;;  %396 = vmatpush.bf16.msra.mxu2 %v2941_v58  ;;  %v2904_v23 = vld [vmem:[%s4522_s17 + $0xc] sm:$0xf]  ;;  %v4181_v25 = vld [vmem:[%s4522_s17 + $0x44] sm:$0xf0]  ;;  %v2992_v26 = vld [vmem:[%s4522_s17] sm:$0xf]  ;;  %v2897_v31 = vor.u32 %v4180_v18, %v2896_v17  ;;  %v2901_v35 = vor.u32 %v4179_v21, %v2898_v22 }
  0x24   : > { %537 = vmatpush.bf16.msra.mxu3 %v3029_v62  ;;  %v4156_v27 = vld [vmem:[%s4522_s17 + $0x38] sm:$0xf0]  ;;  %v4176_v28 = vld [vmem:[%s4522_s17 + $0x34c] sm:$0xf]  ;;  %v3078_v29 = vld [vmem:[%s4522_s17 + $0x384] sm:$0xf0]  ;;  %v2905_v36 = vor.u32 %v4181_v25, %v2904_v23 }
  0x25   : > { %v3084_v30 = vld [vmem:[%s4522_s17 + $0x350] sm:$0xf]  ;;  %v4178_v32 = vld [vmem:[%s4522_s17 + $0x388] sm:$0xf0]  ;;  %v4224_v37 = vld [vmem:[%s4522_s17 + $0x354] sm:$0xf]  ;;  %v2993_v39 = vor.u32 %v4156_v27, %v2992_v26  ;;  %v3081_v40 = vor.u32 %v4176_v28, %v3078_v29 }
  0x26   : > { %371 = vmatpush.bf16.msra.mxu0 %v2921_v4  ;;  %v3173_v33 = vld [vmem:[%s4522_s17 + $0x350] sm:$0xf]  ;;  %v4225_v34 = vld [vmem:[%s4522_s17 + $0x388] sm:$0xf0]  ;;  %v3085_v41 = vor.u32 %v4178_v32, %v3084_v30  ;;  %v4173_v43 = vld [vmem:[%s4522_s17 + $0x2d4] sm:$0xf] }
  0x27   : > { %384 = vmatpush.bf16.msra.mxu1 %v2925_v5  ;;  %397 = vmatpush.bf16.msra.mxu2 %v2929_v6  ;;  %v3175_v38 = vld [vmem:[%s4522_s17 + $0x38c] sm:$0xf0]  ;;  %v3174_v42 = vor.u32 %v4225_v34, %v3173_v33  ;;  %v3072_v45 = vld [vmem:[%s4522_s17 + $0x2d8] sm:$0xf]  ;;  %v4175_v47 = vld [vmem:[%s4522_s17 + $0x310] sm:$0xf0] }
  0x28   : > { %538 = vmatpush.bf16.msra.mxu3 %v3017_v10  ;;  %v3066_v44 = vld [vmem:[%s4522_s17 + $0x30c] sm:$0xf0]  ;;  %v3178_v46 = vor.u32 %v4224_v37, %v3175_v38  ;;  %v3161_v48 = vld [vmem:[%s4522_s17 + $0x2d8] sm:$0xf]  ;;  %v4222_v49 = vld [vmem:[%s4522_s17 + $0x310] sm:$0xf0]  ;;  %v3073_v55 = vor.u32 %v4175_v47, %v3072_v45 }
  0x29   : > { %v4221_v50 = vld [vmem:[%s4522_s17 + $0x2dc] sm:$0xf]  ;;  %v3163_v51 = vld [vmem:[%s4522_s17 + $0x314] sm:$0xf0]  ;;  %v2893_v52 = vld [vmem:[%s5267_s1 + $0x4] sm:$0xf]  ;;  %v3069_v53 = vor.u32 %v4173_v43, %v3066_v44  ;;  %v3162_v56 = vor.u32 %v4222_v49, %v3161_v48 }
  0x2a   : > { %372 = vmatpush.bf16.msra.mxu0 %v2909_v16  ;;  %v4610_v54 = vld [vmem:[%s5267_s1] sm:$0xf]  ;;  %v4170_v57 = vld [vmem:[%s4522_s17 + $0x25c] sm:$0xf]  ;;  %v3054_v58 = vld [vmem:[%s4522_s17 + $0x294] sm:$0xf0]  ;;  %v3166_v60 = vor.u32 %v4221_v50, %v3163_v51 }
  0x2b   : > { %385 = vmatpush.bf16.msra.mxu1 %v2913_v19  ;;  %398 = vmatpush.bf16.msra.mxu2 %v2917_v20  ;;  %v3060_v59 = vld [vmem:[%s4522_s17 + $0x260] sm:$0xf]  ;;  %v4172_v61 = vld [vmem:[%s4522_s17 + $0x298] sm:$0xf0]  ;;  %v4218_v0 = vld [vmem:[%s4522_s17 + $0x264] sm:$0xf]  ;;  %v3057_v2 = vor.u32 %v4170_v57, %v3054_v58 }
  0x2c   : > { %539 = vmatpush.bf16.msra.mxu3 %v3005_v24  ;;  %v3149_v62 = vld [vmem:[%s4522_s17 + $0x260] sm:$0xf]  ;;  %v4219_v63 = vld [vmem:[%s4522_s17 + $0x298] sm:$0xf0]  ;;  %v3061_v3 = vor.u32 %v4172_v61, %v3060_v59  ;;  %v4167_v5 = vld [vmem:[%s4522_s17 + $0x1e4] sm:$0xf] }
  0x2d   : > { %v3151_v1 = vld [vmem:[%s4522_s17 + $0x29c] sm:$0xf0]  ;;  %v3150_v4 = vor.u32 %v4219_v63, %v3149_v62  ;;  %v3048_v7 = vld [vmem:[%s4522_s17 + $0x1e8] sm:$0xf]  ;;  %v4169_v9 = vld [vmem:[%s4522_s17 + $0x220] sm:$0xf0] }
  0x2e   : > { %373 = vmatpush.bf16.msra.mxu0 %v2897_v31  ;;  %v3042_v6 = vld [vmem:[%s4522_s17 + $0x21c] sm:$0xf0]  ;;  %v3154_v8 = vor.u32 %v4218_v0, %v3151_v1  ;;  %v3137_v10 = vld [vmem:[%s4522_s17 + $0x1e8] sm:$0xf]  ;;  %v4216_v11 = vld [vmem:[%s4522_s17 + $0x220] sm:$0xf0]  ;;  %v3049_v15 = vor.u32 %v4169_v9, %v3048_v7 }
  0x2f   : > { %386 = vmatpush.bf16.msra.mxu1 %v2901_v35  ;;  %399 = vmatpush.bf16.msra.mxu2 %v2905_v36  ;;  %v4215_v12 = vld [vmem:[%s4522_s17 + $0x1ec] sm:$0xf]  ;;  %v3139_v13 = vld [vmem:[%s4522_s17 + $0x224] sm:$0xf0]  ;;  %v3045_v14 = vor.u32 %v4167_v5, %v3042_v6  ;;  %v3138_v16 = vor.u32 %v4216_v11, %v3137_v10  ;;  %v3036_v19 = vld [vmem:[%s4522_s17 + $0x170] sm:$0xf] }
  0x30   : > { %540 = vmatpush.bf16.msra.mxu3 %v2993_v39  ;;  %v4164_v17 = vld [vmem:[%s4522_s17 + $0x16c] sm:$0xf]  ;;  %v3030_v18 = vld [vmem:[%s4522_s17 + $0x1a4] sm:$0xf0]  ;;  %v3142_v20 = vor.u32 %v4215_v12, %v3139_v13  ;;  %v3125_v22 = vld [vmem:[%s4522_s17 + $0x170] sm:$0xf] }
  0x31   : > { %374 = vmatmul.bf16.vlgmr.msra.gmra.mxu0 %v2893_v52  ;;  %v4166_v21 = vld [vmem:[%s4522_s17 + $0x1a8] sm:$0xf0]  ;;  %v4212_v24 = vld [vmem:[%s4522_s17 + $0x174] sm:$0xf]  ;;  %v3127_v25 = vld [vmem:[%s4522_s17 + $0x1ac] sm:$0xf0]  ;;  %v3033_v26 = vor.u32 %v4164_v17, %v3030_v18 }
  0x32   : > { %546 = vmatpush.bf16.msrb.mxu0 %v3081_v40  ;;  %400 = vmatmul.bf16.vlgmr.msra.gmra.mxu2 %v2893_v52  ;;  %v4213_v23 = vld [vmem:[%s4522_s17 + $0x1a8] sm:$0xf0]  ;;  %v3037_v27 = vor.u32 %v4166_v21, %v3036_v19  ;;  %v4161_v29 = vld [vmem:[%s4522_s17 + $0xf4] sm:$0xf]  ;;  %v3018_v30 = vld [vmem:[%s4522_s17 + $0x12c] sm:$0xf0]  ;;  %v3130_v32 = vor.u32 %v4212_v24, %v3127_v25 }
  0x33   : > { %559 = vmatpush.bf16.msrb.mxu1 %v3085_v41  ;;  %734 = vmatpush.bf16.msrb.mxu2 %v3174_v42  ;;  %v3126_v28 = vor.u32 %v4213_v23, %v3125_v22  ;;  %v3024_v31 = vld [vmem:[%s4522_s17 + $0xf8] sm:$0xf]  ;;  %v4163_v33 = vld [vmem:[%s4522_s17 + $0x130] sm:$0xf0]  ;;  %v4209_v36 = vld [vmem:[%s4522_s17 + $0xfc] sm:$0xf]  ;;  %v3021_v38 = vor.u32 %v4161_v29, %v3018_v30 }
  0x34   : > { %747 = vmatpush.bf16.msrb.mxu3 %v3178_v46  ;;  %387 = vmatmul.bf16.vlgmr.msra.gmra.mxu1 %v2893_v52  ;;  %v3113_v34 = vld [vmem:[%s4522_s17 + $0xf8] sm:$0xf]  ;;  %v4210_v35 = vld [vmem:[%s4522_s17 + $0x130] sm:$0xf0]  ;;  %v3025_v39 = vor.u32 %v4163_v33, %v3024_v31  ;;  %v4158_v41 = vld [vmem:[%s4522_s17 + $0x7c] sm:$0xf] }
  0x35   : > { %541 = vmatmul.bf16.vlgmr.msra.gmra.mxu3 %v4610_v54  ;;  %v3115_v37 = vld [vmem:[%s4522_s17 + $0x134] sm:$0xf0]  ;;  %v3114_v40 = vor.u32 %v4210_v35, %v3113_v34  ;;  %v3012_v43 = vld [vmem:[%s4522_s17 + $0x80] sm:$0xf]  ;;  %v4160_v45 = vld [vmem:[%s4522_s17 + $0xb8] sm:$0xf0] }
  0x36   : > { %547 = vmatpush.bf16.msrb.mxu0 %v3069_v53  ;;  %v3006_v42 = vld [vmem:[%s4522_s17 + $0xb4] sm:$0xf0]  ;;  %v3118_v44 = vor.u32 %v4209_v36, %v3115_v37  ;;  %v3101_v46 = vld [vmem:[%s4522_s17 + $0x80] sm:$0xf]  ;;  %v4207_v47 = vld [vmem:[%s4522_s17 + $0xb8] sm:$0xf0]  ;;  %v3013_v53 = vor.u32 %v4160_v45, %v3012_v43 }
  0x37   : > { %560 = vmatpush.bf16.msrb.mxu1 %v3073_v55  ;;  %735 = vmatpush.bf16.msrb.mxu2 %v3162_v56  ;;  %v4206_v48 = vld [vmem:[%s4522_s17 + $0x84] sm:$0xf]  ;;  %v3103_v49 = vld [vmem:[%s4522_s17 + $0xbc] sm:$0xf0]  ;;  %v3009_v50 = vor.u32 %v4158_v41, %v3006_v42  ;;  %v3102_v55 = vor.u32 %v4207_v47, %v3101_v46  ;;  %v3000_v56 = vld [vmem:[%s4522_s17 + $0x8] sm:$0xf] }
  0x38   : > { %748 = vmatpush.bf16.msrb.mxu3 %v3166_v60  ;;  %v4155_v51 = vld [vmem:[%s4522_s17 + $0x4] sm:$0xf]  ;;  %v2994_v52 = vld [vmem:[%s4522_s17 + $0x3c] sm:$0xf0]  ;;  %v3089_v58 = vld [vmem:[%s4522_s17 + $0x8] sm:$0xf]  ;;  %v3106_v59 = vor.u32 %v4206_v48, %v3103_v49 }
  0x39   : > { %v4157_v57 = vld [vmem:[%s4522_s17 + $0x40] sm:$0xf0]  ;;  %v4203_v61 = vld [vmem:[%s4522_s17 + $0xc] sm:$0xf]  ;;  %v3091_v62 = vld [vmem:[%s4522_s17 + $0x44] sm:$0xf0] }
  0x3a   : > { %548 = vmatpush.bf16.msrb.mxu0 %v3057_v2  ;;  %v4204_v60 = vld [vmem:[%s4522_s17 + $0x40] sm:$0xf0]  ;;  %v3181_v63 = vld [vmem:[%s4522_s17 + $0x358] sm:$0xf]  ;;  %v4226_v0 = vld [vmem:[%s4522_s17 + $0x390] sm:$0xf0]  ;;  %v2997_v2 = vor.u32 %v4155_v51, %v2994_v52  ;;  %v3001_v6 = vor.u32 %v4157_v57, %v3000_v56  ;;  %v3094_v10 = vor.u32 %v4203_v61, %v3091_v62 }
  0x3b   : > { %561 = vmatpush.bf16.msrb.mxu1 %v3061_v3  ;;  %736 = vmatpush.bf16.msrb.mxu2 %v3150_v4  ;;  %v3270_v1 = vld [vmem:[%s4522_s17 + $0x354] sm:$0xf]  ;;  %v4249_v3 = vld [vmem:[%s4522_s17 + $0x38c] sm:$0xf0]  ;;  %v4248_v4 = vld [vmem:[%s4522_s17 + $0x358] sm:$0xf]  ;;  %v3090_v7 = vor.u32 %v4204_v60, %v3089_v58  ;;  %v3182_v11 = vor.u32 %v4226_v0, %v3181_v63 }
  0x3c   : > { %749 = vmatpush.bf16.msrb.mxu3 %v3154_v8  ;;  %v3272_v5 = vld [vmem:[%s4522_s17 + $0x390] sm:$0xf0]  ;;  %v3278_v8 = vld [vmem:[%s4522_s17 + $0x35c] sm:$0xf]  ;;  %v4250_v9 = vld [vmem:[%s4522_s17 + $0x394] sm:$0xf0]  ;;  %v3271_v12 = vor.u32 %v4249_v3, %v3270_v1 }
  0x3d   : > { %v3275_v13 = vor.u32 %v4248_v4, %v3272_v5  ;;  %v3279_v17 = vor.u32 %v4250_v9, %v3278_v8  ;;  %v4246_v18 = vld [vmem:[%s4522_s17 + $0x314] sm:$0xf0]  ;;  %v4245_v19 = vld [vmem:[%s4522_s17 + $0x2e0] sm:$0xf]  ;;  %v4678_v21 = vld [vmem:[%s5267_s1 + $0x8] sm:$0xf] }
  0x3e   : > { %549 = vmatpush.bf16.msrb.mxu0 %v3045_v14  ;;  %v3169_v14 = vld [vmem:[%s4522_s17 + $0x2e0] sm:$0xf]  ;;  %v3266_v22 = vld [vmem:[%s4522_s17 + $0x2e4] sm:$0xf]  ;;  %v3254_v34 = vld [vmem:[%s4522_s17 + $0x26c] sm:$0xf] }
  0x3f   : > { %562 = vmatpush.bf16.msrb.mxu1 %v3049_v15  ;;  %737 = vmatpush.bf16.msrb.mxu2 %v3138_v16  ;;  %v4223_v15 = vld [vmem:[%s4522_s17 + $0x318] sm:$0xf0]  ;;  %v4247_v23 = vld [vmem:[%s4522_s17 + $0x31c] sm:$0xf0]  ;;  %v3246_v29 = vld [vmem:[%s4522_s17 + $0x264] sm:$0xf] }
  0x40   : > { %750 = vmatpush.bf16.msrb.mxu3 %v3142_v20  ;;  %v3258_v16 = vld [vmem:[%s4522_s17 + $0x2dc] sm:$0xf]  ;;  %v3170_v24 = vor.u32 %v4223_v15, %v3169_v14  ;;  %v3267_v30 = vor.u32 %v4247_v23, %v3266_v22  ;;  %v4243_v31 = vld [vmem:[%s4522_s17 + $0x29c] sm:$0xf0]  ;;  %v3248_v33 = vld [vmem:[%s4522_s17 + $0x2a0] sm:$0xf0] }
  0x41   : > { %v3260_v20 = vld [vmem:[%s4522_s17 + $0x318] sm:$0xf0]  ;;  %v3259_v25 = vor.u32 %v4246_v18, %v3258_v16  ;;  %v4244_v35 = vld [vmem:[%s4522_s17 + $0x2a4] sm:$0xf0]  ;;  %v3247_v37 = vor.u32 %v4243_v31, %v3246_v29  ;;  %v3234_v41 = vld [vmem:[%s4522_s17 + $0x1ec] sm:$0xf] }
  0x42   : > { %550 = vmatpush.bf16.msrb.mxu0 %v3033_v26  ;;  %v3263_v26 = vor.u32 %v4245_v19, %v3260_v20  ;;  %v3255_v42 = vor.u32 %v4244_v35, %v3254_v34  ;;  %v4240_v43 = vld [vmem:[%s4522_s17 + $0x224] sm:$0xf0]  ;;  %v3236_v45 = vld [vmem:[%s4522_s17 + $0x228] sm:$0xf0]  ;;  %v4241_v46 = vld [vmem:[%s4522_s17 + $0x22c] sm:$0xf0] }
  0x43   : > { %563 = vmatpush.bf16.msrb.mxu1 %v3037_v27  ;;  %738 = vmatpush.bf16.msrb.mxu2 %v3126_v28  ;;  %v3157_v27 = vld [vmem:[%s4522_s17 + $0x268] sm:$0xf]  ;;  %v4220_v28 = vld [vmem:[%s4522_s17 + $0x2a0] sm:$0xf0]  ;;  %v3235_v48 = vor.u32 %v4240_v43, %v3234_v41  ;;  %v4214_v51 = vld [vmem:[%s4522_s17 + $0x1b0] sm:$0xf0] }
  0x44   : > { %751 = vmatpush.bf16.msrb.mxu3 %v3130_v32  ;;  %v4242_v32 = vld [vmem:[%s4522_s17 + $0x268] sm:$0xf]  ;;  %v3158_v36 = vor.u32 %v4220_v28, %v3157_v27  ;;  %v3222_v52 = vld [vmem:[%s4522_s17 + $0x174] sm:$0xf]  ;;  %v4236_v56 = vld [vmem:[%s4522_s17 + $0x178] sm:$0xf] }
  0x45   : > { %v3224_v57 = vld [vmem:[%s4522_s17 + $0x1b0] sm:$0xf0]  ;;  %v3230_v58 = vld [vmem:[%s4522_s17 + $0x17c] sm:$0xf]  ;;  %v3121_v63 = vld [vmem:[%s4522_s17 + $0x100] sm:$0xf] }
  0x46   : > { %551 = vmatpush.bf16.msrb.mxu0 %v3021_v38  ;;  %v3251_v38 = vor.u32 %v4242_v32, %v3248_v33  ;;  %v3227_v62 = vor.u32 %v4236_v56, %v3224_v57  ;;  %v4211_v0 = vld [vmem:[%s4522_s17 + $0x138] sm:$0xf0]  ;;  %v4234_v3 = vld [vmem:[%s4522_s17 + $0x134] sm:$0xf0]  ;;  %v4233_v4 = vld [vmem:[%s4522_s17 + $0x100] sm:$0xf] }
  0x47   : > { %564 = vmatpush.bf16.msrb.mxu1 %v3025_v39  ;;  %739 = vmatpush.bf16.msrb.mxu2 %v3114_v40  ;;  %v3145_v39 = vld [vmem:[%s4522_s17 + $0x1f0] sm:$0xf]  ;;  %v4217_v40 = vld [vmem:[%s4522_s17 + $0x228] sm:$0xf0]  ;;  %v3210_v1 = vld [vmem:[%s4522_s17 + $0xfc] sm:$0xf]  ;;  %v3122_v8 = vor.u32 %v4211_v0, %v3121_v63 }
  0x48   : > { %752 = vmatpush.bf16.msrb.mxu3 %v3118_v44  ;;  %v4239_v44 = vld [vmem:[%s4522_s17 + $0x1f0] sm:$0xf]  ;;  %v3146_v47 = vor.u32 %v4217_v40, %v3145_v39  ;;  %v3212_v5 = vld [vmem:[%s4522_s17 + $0x138] sm:$0xf0]  ;;  %v3211_v9 = vor.u32 %v4234_v3, %v3210_v1  ;;  %v4231_v15 = vld [vmem:[%s4522_s17 + $0xbc] sm:$0xf0] }
  0x49   : > { %v3239_v49 = vor.u32 %v4239_v44, %v3236_v45  ;;  %v4230_v16 = vld [vmem:[%s4522_s17 + $0x88] sm:$0xf]  ;;  %v3206_v18 = vld [vmem:[%s4522_s17 + $0x8c] sm:$0xf]  ;;  %v3097_v22 = vld [vmem:[%s4522_s17 + $0x10] sm:$0xf] }
  0x4a   : > { %552 = vmatpush.bf16.msrb.mxu0 %v3009_v50  ;;  %v3133_v50 = vld [vmem:[%s4522_s17 + $0x178] sm:$0xf]  ;;  %v4232_v19 = vld [vmem:[%s4522_s17 + $0xc4] sm:$0xf0]  ;;  %v4205_v23 = vld [vmem:[%s4522_s17 + $0x48] sm:$0xf0] }
  0x4b   : > { %565 = vmatpush.bf16.msrb.mxu1 %v3013_v53  ;;  %740 = vmatpush.bf16.msrb.mxu2 %v3102_v55  ;;  %v4237_v55 = vld [vmem:[%s4522_s17 + $0x1ac] sm:$0xf0]  ;;  %v3134_v60 = vor.u32 %v4214_v51, %v3133_v50  ;;  %v4228_v27 = vld [vmem:[%s4522_s17 + $0x44] sm:$0xf0]  ;;  %v3207_v29 = vor.u32 %v4232_v19, %v3206_v18  ;;  %v3194_v31 = vld [vmem:[%s4522_s17 + $0x14] sm:$0xf] }
  0x4c   : > { %753 = vmatpush.bf16.msrb.mxu3 %v3106_v59  ;;  %v4238_v59 = vld [vmem:[%s4522_s17 + $0x1b4] sm:$0xf0]  ;;  %v3223_v61 = vor.u32 %v4237_v55, %v3222_v52  ;;  %v4227_v28 = vld [vmem:[%s4522_s17 + $0x10] sm:$0xf]  ;;  %v4273_v34 = vld [vmem:[%s4522_s17 + $0x390] sm:$0xf0] }
  0x4d   : > { %v4229_v32 = vld [vmem:[%s4522_s17 + $0x4c] sm:$0xf0]  ;;  %v3367_v33 = vld [vmem:[%s4522_s17 + $0x358] sm:$0xf]  ;;  %v4272_v35 = vld [vmem:[%s4522_s17 + $0x35c] sm:$0xf] }
  0x4e   : > { %553 = vmatpush.bf16.msrb.mxu0 %v2997_v2  ;;  %v3231_v2 = vor.u32 %v4238_v59, %v3230_v58  ;;  %v4274_v39 = vld [vmem:[%s4522_s17 + $0x398] sm:$0xf0]  ;;  %v4297_v43 = vld [vmem:[%s4522_s17 + $0x394] sm:$0xf0]  ;;  %v3195_v44 = vor.u32 %v4229_v32, %v3194_v31  ;;  %v3368_v45 = vor.u32 %v4273_v34, %v3367_v33  ;;  %v3357_v51 = vld [vmem:[%s4522_s17 + $0x31c] sm:$0xf0] }
  0x4f   : > { %566 = vmatpush.bf16.msrb.mxu1 %v3001_v6  ;;  %741 = vmatpush.bf16.msrb.mxu2 %v3090_v7  ;;  %v3218_v6 = vld [vmem:[%s4522_s17 + $0x104] sm:$0xf]  ;;  %v4235_v7 = vld [vmem:[%s4522_s17 + $0x13c] sm:$0xf0]  ;;  %v3363_v52 = vld [vmem:[%s4522_s17 + $0x2e8] sm:$0xf] }
  0x50   : > { %754 = vmatpush.bf16.msrb.mxu3 %v3094_v10  ;;  %v3215_v10 = vor.u32 %v4233_v4, %v3212_v5  ;;  %v3219_v14 = vor.u32 %v4235_v7, %v3218_v6  ;;  %v3452_v55 = vld [vmem:[%s4522_s17 + $0x2e4] sm:$0xf]  ;;  %v4294_v56 = vld [vmem:[%s4522_s17 + $0x31c] sm:$0xf0]  ;;  %v3183_v57 = vld [vmem:[%s5267_s1 + $0xc] sm:$0xf] }
  0x51   : > { %554 = vmatmul.bf16.vlgmr.msrb.gmra.mxu0 %v4610_v54  ;;  %v4266_v63 = vld [vmem:[%s4522_s17 + $0x26c] sm:$0xf]  ;;  %v3453_v0 = vor.u32 %v4294_v56, %v3452_v55  ;;  %v3345_v1 = vld [vmem:[%s4522_s17 + $0x2a4] sm:$0xf0]  ;;  %v3307_v33 = vld [vmem:[%s4522_s17 + $0x100] sm:$0xf] }
  0x52   : > { %760 = vmatpush.bf16.msra.mxu0 %v3182_v11  ;;  %742 = vmatmul.bf16.vlgmr.msrb.gmra.mxu2 %v4678_v21  ;;  %v3109_v11 = vld [vmem:[%s4522_s17 + $0x88] sm:$0xf]  ;;  %v4268_v3 = vld [vmem:[%s4522_s17 + $0x2a8] sm:$0xf0]  ;;  %v4258_v34 = vld [vmem:[%s4522_s17 + $0x138] sm:$0xf0] }
  0x53   : > { %938 = vmatpush.bf16.msra.mxu1 %v3271_v12  ;;  %951 = vmatpush.bf16.msra.mxu2 %v3275_v13  ;;  %v4208_v12 = vld [vmem:[%s4522_s17 + $0xc0] sm:$0xf0]  ;;  %v3440_v4 = vld [vmem:[%s4522_s17 + $0x26c] sm:$0xf]  ;;  %v4291_v5 = vld [vmem:[%s4522_s17 + $0x2a4] sm:$0xf0] }
  0x54   : > { %964 = vmatpush.bf16.msra.mxu3 %v3279_v17  ;;  %567 = vmatmul.bf16.vlgmr.msrb.gmra.mxu1 %v4610_v54  ;;  %v3242_v54 = vld [vmem:[%s4522_s17 + $0x1f4] sm:$0xf]  ;;  %v3198_v13 = vld [vmem:[%s4522_s17 + $0x84] sm:$0xf]  ;;  %v3110_v20 = vor.u32 %v4208_v12, %v3109_v11  ;;  %v3441_v11 = vor.u32 %v4291_v5, %v3440_v4  ;;  %v3333_v12 = vld [vmem:[%s4522_s17 + $0x22c] sm:$0xf0] }
  0x55   : > { %755 = vmatmul.bf16.vlgmr.msrb.gmra.mxu3 %v4678_v21  ;;  %v3243_v53 = vor.u32 %v4241_v46, %v3242_v54  ;;  %v3200_v17 = vld [vmem:[%s4522_s17 + $0xc0] sm:$0xf0]  ;;  %v3283_v55 = vld [vmem:[%s4522_s17 + $0x10] sm:$0xf]  ;;  %v4252_v56 = vld [vmem:[%s4522_s17 + $0x48] sm:$0xf0] }
  0x56   : > { %761 = vmatpush.bf16.msra.mxu0 %v3170_v24  ;;  %v3199_v24 = vor.u32 %v4231_v15, %v3198_v13  ;;  %v3339_v13 = vld [vmem:[%s4522_s17 + $0x1f8] sm:$0xf]  ;;  %v3428_v15 = vld [vmem:[%s4522_s17 + $0x1f4] sm:$0xf]  ;;  %v3472_v4 = vld [vmem:[%s4522_s17 + $0x364] sm:$0xf]  ;;  %v3284_v5 = vor.u32 %v4252_v56, %v3283_v55 }
  0x57   : > { %939 = vmatpush.bf16.msra.mxu1 %v3259_v25  ;;  %952 = vmatpush.bf16.msra.mxu2 %v3263_v26  ;;  %v3203_v25 = vor.u32 %v4230_v16, %v3200_v17  ;;  %v3186_v26 = vld [vmem:[%s4522_s17 + $0xc] sm:$0xf]  ;;  %v4288_v16 = vld [vmem:[%s4522_s17 + $0x22c] sm:$0xf0]  ;;  %v4284_v55 = vld [vmem:[%s4522_s17 + $0x180] sm:$0xf] }
  0x58   : > { %965 = vmatpush.bf16.msra.mxu3 %v3267_v30  ;;  %v3188_v30 = vld [vmem:[%s4522_s17 + $0x48] sm:$0xf0]  ;;  %v3187_v40 = vor.u32 %v4228_v27, %v3186_v26  ;;  %v3327_v26 = vld [vmem:[%s4522_s17 + $0x180] sm:$0xf]  ;;  %v4262_v27 = vld [vmem:[%s4522_s17 + $0x1b8] sm:$0xf0] }
  0x59   : > { %v3191_v41 = vor.u32 %v4227_v28, %v3188_v30  ;;  %v3416_v28 = vld [vmem:[%s4522_s17 + $0x17c] sm:$0xf]  ;;  %v3328_v32 = vor.u32 %v4262_v27, %v3327_v26  ;;  %v3551_v26 = vld [vmem:[%s4522_s17 + $0x324] sm:$0xf0]  ;;  %v4824_v27 = vld [vmem:[%s5267_s1 + $0x14] sm:$0xf] }
  0x5a   : > { %762 = vmatpush.bf16.msra.mxu0 %v3158_v36  ;;  %v3098_v36 = vor.u32 %v4205_v23, %v3097_v22  ;;  %v4261_v22 = vld [vmem:[%s4522_s17 + $0x1b0] sm:$0xf0]  ;;  %v4260_v23 = vld [vmem:[%s4522_s17 + $0x17c] sm:$0xf] }
  0x5b   : > { %940 = vmatpush.bf16.msra.mxu1 %v3247_v37  ;;  %953 = vmatpush.bf16.msra.mxu2 %v3251_v38  ;;  %v3369_v37 = vld [vmem:[%s4522_s17 + $0x394] sm:$0xf0]  ;;  %v3375_v38 = vld [vmem:[%s4522_s17 + $0x360] sm:$0xf]  ;;  %v3418_v56 = vld [vmem:[%s4522_s17 + $0x1b8] sm:$0xf0] }
  0x5c   : > { %966 = vmatpush.bf16.msra.mxu3 %v3255_v42  ;;  %v3464_v42 = vld [vmem:[%s4522_s17 + $0x35c] sm:$0xf]  ;;  %v3372_v54 = vor.u32 %v4272_v35, %v3369_v37  ;;  %v3376_v46 = vor.u32 %v4274_v39, %v3375_v38  ;;  %v4257_v35 = vld [vmem:[%s4522_s17 + $0x104] sm:$0xf]  ;;  %v3309_v37 = vld [vmem:[%s4522_s17 + $0x13c] sm:$0xf0] }
  0x5d   : > { %v3465_v50 = vor.u32 %v4297_v43, %v3464_v42  ;;  %v3315_v38 = vld [vmem:[%s4522_s17 + $0x108] sm:$0xf]  ;;  %v4259_v39 = vld [vmem:[%s4522_s17 + $0x140] sm:$0xf0]  ;;  %v3308_v42 = vor.u32 %v4258_v34, %v3307_v33  ;;  %v3312_v43 = vor.u32 %v4257_v35, %v3309_v37  ;;  %v3448_v33 = vld [vmem:[%s4522_s17 + $0x274] sm:$0xf] }
  0x5e   : > { %763 = vmatpush.bf16.msra.mxu0 %v3146_v47  ;;  %v3355_v47 = vld [vmem:[%s4522_s17 + $0x2e0] sm:$0xf]  ;;  %v4292_v35 = vld [vmem:[%s4522_s17 + $0x2ac] sm:$0xf0]  ;;  %v4315_v37 = vld [vmem:[%s4522_s17 + $0x2a8] sm:$0xf0] }
  0x5f   : > { %941 = vmatpush.bf16.msra.mxu1 %v3235_v48  ;;  %954 = vmatpush.bf16.msra.mxu2 %v3239_v49  ;;  %v4270_v48 = vld [vmem:[%s4522_s17 + $0x318] sm:$0xf0]  ;;  %v4269_v49 = vld [vmem:[%s4522_s17 + $0x2e4] sm:$0xf] }
  0x60   : > { %967 = vmatpush.bf16.msra.mxu3 %v3243_v53  ;;  %v4271_v53 = vld [vmem:[%s4522_s17 + $0x320] sm:$0xf0]  ;;  %v3356_v58 = vor.u32 %v4270_v48, %v3355_v47  ;;  %v3360_v59 = vor.u32 %v4269_v49, %v3357_v51  ;;  %v3297_v48 = vld [vmem:[%s4522_s17 + $0xc4] sm:$0xf0]  ;;  %v3303_v49 = vld [vmem:[%s4522_s17 + $0x90] sm:$0xf] }
  0x61   : > { %v3392_v51 = vld [vmem:[%s4522_s17 + $0x8c] sm:$0xf] }
  0x62   : > { %764 = vmatpush.bf16.msra.mxu0 %v3134_v60  ;;  %v3364_v60 = vor.u32 %v4271_v53, %v3363_v52  ;;  %v4279_v52 = vld [vmem:[%s4522_s17 + $0xc4] sm:$0xf0] }
  0x63   : > { %942 = vmatpush.bf16.msra.mxu1 %v3223_v61  ;;  %955 = vmatpush.bf16.msra.mxu2 %v3227_v62  ;;  %v3343_v61 = vld [vmem:[%s4522_s17 + $0x268] sm:$0xf]  ;;  %v4267_v62 = vld [vmem:[%s4522_s17 + $0x2a0] sm:$0xf0] }
  0x64   : > { %968 = vmatpush.bf16.msra.mxu3 %v3231_v2  ;;  %v3351_v2 = vld [vmem:[%s4522_s17 + $0x270] sm:$0xf]  ;;  %v3344_v6 = vor.u32 %v4267_v62, %v3343_v61  ;;  %v3291_v61 = vld [vmem:[%s4522_s17 + $0x18] sm:$0xf]  ;;  %v3393_v62 = vor.u32 %v4279_v52, %v3392_v51 }
  0x65   : > { %v3352_v7 = vor.u32 %v4268_v3, %v3351_v2  ;;  %v4296_v2 = vld [vmem:[%s4522_s17 + $0x360] sm:$0xf]  ;;  %v3466_v3 = vld [vmem:[%s4522_s17 + $0x398] sm:$0xf0] }
  0x66   : > { %765 = vmatpush.bf16.msra.mxu0 %v3122_v8  ;;  %v3331_v8 = vld [vmem:[%s4522_s17 + $0x1f0] sm:$0xf] }
  0x67   : > { %943 = vmatpush.bf16.msra.mxu1 %v3211_v9  ;;  %956 = vmatpush.bf16.msra.mxu2 %v3215_v10  ;;  %v4264_v9 = vld [vmem:[%s4522_s17 + $0x228] sm:$0xf0]  ;;  %v4263_v10 = vld [vmem:[%s4522_s17 + $0x1f4] sm:$0xf] }
  0x68   : > { %969 = vmatpush.bf16.msra.mxu3 %v3219_v14  ;;  %v4265_v14 = vld [vmem:[%s4522_s17 + $0x230] sm:$0xf0]  ;;  %v3332_v17 = vor.u32 %v4264_v9, %v3331_v8  ;;  %v3336_v18 = vor.u32 %v4263_v10, %v3333_v12  ;;  %v4320_v10 = vld [vmem:[%s4522_s17 + $0x364] sm:$0xf] }
  0x69   : > { %v3340_v19 = vor.u32 %v4265_v14, %v3339_v13  ;;  %v3469_v13 = vor.u32 %v4296_v2, %v3466_v3  ;;  %v4281_v3 = vld [vmem:[%s4522_s17 + $0x108] sm:$0xf] }
  0x6a   : > { %766 = vmatpush.bf16.msra.mxu0 %v3110_v20  ;;  %v3319_v20 = vld [vmem:[%s4522_s17 + $0x178] sm:$0xf] }
  0x6b   : > { %944 = vmatpush.bf16.msra.mxu1 %v3199_v24  ;;  %957 = vmatpush.bf16.msra.mxu2 %v3203_v25  ;;  %v3429_v24 = vor.u32 %v4288_v16, %v3428_v15  ;;  %v3321_v25 = vld [vmem:[%s4522_s17 + $0x1b4] sm:$0xf0]  ;;  %v3320_v30 = vor.u32 %v4261_v22, %v3319_v20  ;;  %v4293_v16 = vld [vmem:[%s4522_s17 + $0x2e8] sm:$0xf] }
  0x6c   : > { %970 = vmatpush.bf16.msra.mxu3 %v3207_v29  ;;  %v4285_v29 = vld [vmem:[%s4522_s17 + $0x1b4] sm:$0xf0]  ;;  %v3324_v31 = vor.u32 %v4260_v23, %v3321_v25  ;;  %v4295_v20 = vld [vmem:[%s4522_s17 + $0x324] sm:$0xf0]  ;;  %v4318_v23 = vld [vmem:[%s4522_s17 + $0x320] sm:$0xf0] }
  0x6d   : > { %v3549_v22 = vld [vmem:[%s4522_s17 + $0x2e8] sm:$0xf]  ;;  %v4317_v25 = vld [vmem:[%s4522_s17 + $0x2ec] sm:$0xf] }
  0x6e   : > { %767 = vmatpush.bf16.msra.mxu0 %v3098_v36  ;;  %v3417_v36 = vor.u32 %v4285_v29, %v3416_v28  ;;  %v3554_v34 = vor.u32 %v4317_v25, %v3551_v26  ;;  %v4275_v25 = vld [vmem:[%s4522_s17 + $0x18] sm:$0xf]  ;;  %v3382_v26 = vld [vmem:[%s4522_s17 + $0x50] sm:$0xf0] }
  0x6f   : > { %945 = vmatpush.bf16.msra.mxu1 %v3187_v40  ;;  %958 = vmatpush.bf16.msra.mxu2 %v3191_v41  ;;  %v3404_v40 = vld [vmem:[%s4522_s17 + $0x104] sm:$0xf]  ;;  %v4282_v41 = vld [vmem:[%s4522_s17 + $0x13c] sm:$0xf0] }
  0x70   : > { %971 = vmatpush.bf16.msra.mxu3 %v3195_v44  ;;  %v3316_v44 = vor.u32 %v4259_v39, %v3315_v38  ;;  %v3405_v47 = vor.u32 %v4282_v41, %v3404_v40  ;;  %v4314_v38 = vld [vmem:[%s4522_s17 + $0x274] sm:$0xf]  ;;  %v3539_v39 = vld [vmem:[%s4522_s17 + $0x2ac] sm:$0xf0]  ;;  %v3449_v41 = vor.u32 %v4292_v35, %v3448_v33  ;;  %v4299_v35 = vld [vmem:[%s4522_s17 + $0x1c] sm:$0xf] }
  0x71   : > { %768 = vmatmul.bf16.vlgmr.msra.gmra.mxu0 %v4678_v21  ;;  %v3348_v21 = vor.u32 %v4266_v63, %v3345_v1  ;;  %v4253_v63 = vld [vmem:[%s4522_s17 + $0x50] sm:$0xf0]  ;;  %v4276_v1 = vld [vmem:[%s4522_s17 + $0x4c] sm:$0xf0] }
  0x72   : > { %1142 = vmatpush.bf16.msrb.mxu0 %v3368_v45  ;;  %946 = vmatmul.bf16.vlgmr.msra.gmra.mxu1 %v3183_v57  ;;  %v3295_v45 = vld [vmem:[%s4522_s17 + $0x88] sm:$0xf]  ;;  %v3292_v9 = vor.u32 %v4253_v63, %v3291_v61  ;;  %v4309_v61 = vld [vmem:[%s4522_s17 + $0x1b8] sm:$0xf0]  ;;  %v3515_v63 = vld [vmem:[%s4522_s17 + $0x1bc] sm:$0xf0] }
  0x73   : > { %1155 = vmatpush.bf16.msrb.mxu1 %v3372_v54  ;;  %1168 = vmatpush.bf16.msrb.mxu2 %v3376_v46  ;;  %v4255_v54 = vld [vmem:[%s4522_s17 + $0xc0] sm:$0xf0]  ;;  %v4254_v46 = vld [vmem:[%s4522_s17 + $0x8c] sm:$0xf] }
  0x74   : > { %1346 = vmatpush.bf16.msrb.mxu3 %v3465_v50  ;;  %959 = vmatmul.bf16.vlgmr.msra.gmra.mxu2 %v3183_v57  ;;  %v4256_v50 = vld [vmem:[%s4522_s17 + $0xc8] sm:$0xf0]  ;;  %v3296_v53 = vor.u32 %v4255_v54, %v3295_v45  ;;  %v3436_v45 = vld [vmem:[%s4522_s17 + $0x1fc] sm:$0xf]  ;;  %v3542_v54 = vor.u32 %v4314_v38, %v3539_v39  ;;  %v4322_v38 = vld [vmem:[%s4522_s17 + $0x3a0] sm:$0xf0] }
  0x75   : > { %972 = vmatmul.bf16.vlgmr.msra.gmra.mxu3 %v3183_v57  ;;  %v3300_v57 = vor.u32 %v4254_v46, %v3297_v48  ;;  %v4289_v46 = vld [vmem:[%s4522_s17 + $0x234] sm:$0xf0]  ;;  %v4312_v48 = vld [vmem:[%s4522_s17 + $0x230] sm:$0xf0]  ;;  %v3658_v39 = vld [vmem:[%s4522_s17 + $0x364] sm:$0xf] }
  0x76   : > { %1143 = vmatpush.bf16.msrb.mxu0 %v3356_v58  ;;  %v3304_v58 = vor.u32 %v4256_v50, %v3303_v49  ;;  %v4311_v49 = vld [vmem:[%s4522_s17 + $0x1fc] sm:$0xf]  ;;  %v3527_v50 = vld [vmem:[%s4522_s17 + $0x234] sm:$0xf0]  ;;  %v3437_v52 = vor.u32 %v4289_v46, %v3436_v45  ;;  %v4346_v46 = vld [vmem:[%s4522_s17 + $0x3a4] sm:$0xf0] }
  0x77   : > { %1156 = vmatpush.bf16.msrb.mxu1 %v3360_v59  ;;  %1169 = vmatpush.bf16.msrb.mxu2 %v3364_v60  ;;  %v4251_v59 = vld [vmem:[%s4522_s17 + $0x14] sm:$0xf]  ;;  %v3285_v60 = vld [vmem:[%s4522_s17 + $0x4c] sm:$0xf0] }
  0x78   : > { %1347 = vmatpush.bf16.msrb.mxu3 %v3453_v0  ;;  %v3380_v0 = vld [vmem:[%s4522_s17 + $0x14] sm:$0xf]  ;;  %v3288_v8 = vor.u32 %v4251_v59, %v3285_v60  ;;  %v4286_v59 = vld [vmem:[%s4522_s17 + $0x1bc] sm:$0xf0] }
  0x79   : > { %v3381_v12 = vor.u32 %v4276_v1, %v3380_v0  ;;  %v3513_v60 = vld [vmem:[%s4522_s17 + $0x180] sm:$0xf]  ;;  %v3421_v0 = vor.u32 %v4284_v55, %v3418_v56  ;;  %v4342_v56 = vld [vmem:[%s4522_s17 + $0x324] sm:$0xf0] }
  0x7a   : > { %1144 = vmatpush.bf16.msrb.mxu0 %v3344_v6  ;;  %v4298_v6 = vld [vmem:[%s4522_s17 + $0x39c] sm:$0xf0]  ;;  %v3514_v2 = vor.u32 %v4309_v61, %v3513_v60  ;;  %v4343_v60 = vld [vmem:[%s4522_s17 + $0x32c] sm:$0xf0]  ;;  %v4894_v61 = vld [vmem:[%s5267_s1 + $0x18] sm:$0xf] }
  0x7b   : > { %1157 = vmatpush.bf16.msrb.mxu1 %v3348_v21  ;;  %1170 = vmatpush.bf16.msrb.mxu2 %v3352_v7  ;;  %v3561_v21 = vld [vmem:[%s4522_s17 + $0x360] sm:$0xf]  ;;  %v4321_v7 = vld [vmem:[%s4522_s17 + $0x398] sm:$0xf0]  ;;  %v3473_v14 = vor.u32 %v4298_v6, %v3472_v4  ;;  %v3406_v4 = vld [vmem:[%s4522_s17 + $0x140] sm:$0xf0] }
  0x7c   : > { %1348 = vmatpush.bf16.msrb.mxu3 %v3441_v11  ;;  %v3563_v11 = vld [vmem:[%s4522_s17 + $0x39c] sm:$0xf0]  ;;  %v3562_v15 = vor.u32 %v4321_v7, %v3561_v21  ;;  %v4283_v21 = vld [vmem:[%s4522_s17 + $0x144] sm:$0xf0] }
  0x7d   : > { %v3501_v7 = vld [vmem:[%s4522_s17 + $0x108] sm:$0xf] }
  0x7e   : > { %1145 = vmatpush.bf16.msrb.mxu0 %v3332_v17  ;;  %v3454_v17 = vld [vmem:[%s4522_s17 + $0x320] sm:$0xf0] }
  0x7f   : > { %1158 = vmatpush.bf16.msrb.mxu1 %v3336_v18  ;;  %1171 = vmatpush.bf16.msrb.mxu2 %v3340_v19  ;;  %v3460_v18 = vld [vmem:[%s4522_s17 + $0x2ec] sm:$0xf]  ;;  %v3566_v19 = vor.u32 %v4320_v10, %v3563_v11  ;;  %v3457_v28 = vor.u32 %v4293_v16, %v3454_v17  ;;  %v3503_v10 = vld [vmem:[%s4522_s17 + $0x144] sm:$0xf0]  ;;  %v3409_v11 = vor.u32 %v4281_v3, %v3406_v4  ;;  %v3400_v16 = vld [vmem:[%s4522_s17 + $0x94] sm:$0xf] }
  0x80   : > { %1349 = vmatpush.bf16.msrb.mxu3 %v3429_v24  ;;  %v3280_v24 = vld [vmem:[%s5267_s1 + $0x10] sm:$0xf]  ;;  %v3461_v29 = vor.u32 %v4295_v20, %v3460_v18  ;;  %v4303_v20 = vld [vmem:[%s4522_s17 + $0xc8] sm:$0xf0]  ;;  %v3634_v3 = vld [vmem:[%s4522_s17 + $0x274] sm:$0xf] }
  0x81   : > { %v4280_v18 = vld [vmem:[%s4522_s17 + $0xcc] sm:$0xf0] }
  0x82   : > { %1146 = vmatpush.bf16.msrb.mxu0 %v3320_v30  ;;  %v3550_v30 = vor.u32 %v4318_v23, %v3549_v22  ;;  %v4302_v22 = vld [vmem:[%s4522_s17 + $0x94] sm:$0xf]  ;;  %v3491_v23 = vld [vmem:[%s4522_s17 + $0xcc] sm:$0xf0] }
  0x83   : > { %1159 = vmatpush.bf16.msrb.mxu1 %v3324_v31  ;;  %1172 = vmatpush.bf16.msrb.mxu2 %v3328_v32  ;;  %v4290_v31 = vld [vmem:[%s4522_s17 + $0x270] sm:$0xf]  ;;  %v3442_v32 = vld [vmem:[%s4522_s17 + $0x2a8] sm:$0xf0]  ;;  %v3494_v33 = vor.u32 %v4302_v22, %v3491_v23 }
  0x84   : > { %1350 = vmatpush.bf16.msrb.mxu3 %v3417_v36  ;;  %v3537_v36 = vld [vmem:[%s4522_s17 + $0x270] sm:$0xf]  ;;  %v3445_v40 = vor.u32 %v4290_v31, %v3442_v32  ;;  %v4277_v31 = vld [vmem:[%s4522_s17 + $0x54] sm:$0xf0] }
  0x85   : > { %v3477_v32 = vld [vmem:[%s4522_s17 + $0x18] sm:$0xf] }
  0x86   : > { %1147 = vmatpush.bf16.msrb.mxu0 %v3308_v42  ;;  %v3538_v42 = vor.u32 %v4315_v37, %v3537_v36  ;;  %v3479_v36 = vld [vmem:[%s4522_s17 + $0x54] sm:$0xf0]  ;;  %v3569_v37 = vld [vmem:[%s4522_s17 + $0x368] sm:$0xf] }
  0x87   : > { %1160 = vmatpush.bf16.msrb.mxu1 %v3312_v43  ;;  %1173 = vmatpush.bf16.msrb.mxu2 %v3316_v44  ;;  %v4287_v43 = vld [vmem:[%s4522_s17 + $0x1f8] sm:$0xf]  ;;  %v3430_v44 = vld [vmem:[%s4522_s17 + $0x230] sm:$0xf0] }
  0x88   : > { %1351 = vmatpush.bf16.msrb.mxu3 %v3405_v47  ;;  %v3525_v47 = vld [vmem:[%s4522_s17 + $0x1f8] sm:$0xf]  ;;  %v3433_v51 = vor.u32 %v4287_v43, %v3430_v44  ;;  %v3660_v43 = vld [vmem:[%s4522_s17 + $0x3a0] sm:$0xf0] }
  0x8a   : > { %1148 = vmatpush.bf16.msrb.mxu0 %v3296_v53  ;;  %v3526_v53 = vor.u32 %v4312_v48, %v3525_v47  ;;  %v3482_v47 = vor.u32 %v4299_v35, %v3479_v36  ;;  %v3570_v48 = vor.u32 %v4322_v38, %v3569_v37  ;;  %v4334_v35 = vld [vmem:[%s4522_s17 + $0x1c4] sm:$0xf0] }
  0x8b   : > { %1161 = vmatpush.bf16.msrb.mxu1 %v3300_v57  ;;  %1174 = vmatpush.bf16.msrb.mxu2 %v3304_v58  ;;  %v3424_v57 = vld [vmem:[%s4522_s17 + $0x184] sm:$0xf]  ;;  %v3530_v58 = vor.u32 %v4311_v49, %v3527_v50 }
  0x8c   : > { %1352 = vmatpush.bf16.msrb.mxu3 %v3393_v62  ;;  %v4308_v62 = vld [vmem:[%s4522_s17 + $0x184] sm:$0xf]  ;;  %v3425_v1 = vor.u32 %v4286_v59, %v3424_v57  ;;  %v4341_v57 = vld [vmem:[%s4522_s17 + $0x2f0] sm:$0xf]  ;;  %v3654_v59 = vld [vmem:[%s4522_s17 + $0x2f4] sm:$0xf] }
  0x8d   : > { %v3518_v6 = vor.u32 %v4308_v62, %v3515_v63  ;;  %v3655_v4 = vor.u32 %v4343_v60, %v3654_v59  ;;  %v4327_v60 = vld [vmem:[%s4522_s17 + $0xcc] sm:$0xf0] }
  0x8e   : > { %1149 = vmatpush.bf16.msrb.mxu0 %v3284_v5  ;;  %v3412_v5 = vld [vmem:[%s4522_s17 + $0x10c] sm:$0xf] }
  0x8f   : > { %1162 = vmatpush.bf16.msrb.mxu1 %v3288_v8  ;;  %1175 = vmatpush.bf16.msrb.mxu2 %v3292_v9  ;;  %v4306_v8 = vld [vmem:[%s4522_s17 + $0x140] sm:$0xf0]  ;;  %v4305_v9 = vld [vmem:[%s4522_s17 + $0x10c] sm:$0xf] }
  0x90   : > { %1353 = vmatpush.bf16.msrb.mxu3 %v3381_v12  ;;  %v3413_v12 = vor.u32 %v4283_v21, %v3412_v5  ;;  %v3506_v17 = vor.u32 %v4305_v9, %v3503_v10  ;;  %v4339_v5 = vld [vmem:[%s4522_s17 + $0x2ac] sm:$0xf0]  ;;  %v3636_v21 = vld [vmem:[%s4522_s17 + $0x2b0] sm:$0xf0] }
  0x91   : > { %1150 = vmatmul.bf16.vlgmr.msrb.gmra.mxu0 %v3280_v24  ;;  %v3635_v10 = vor.u32 %v4339_v5, %v3634_v3  ;;  %v3485_v3 = vld [vmem:[%s4522_s17 + $0x20] sm:$0xf] }
  0x92   : > { %1359 = vmatpush.bf16.msra.mxu0 %v3469_v13  ;;  %1163 = vmatmul.bf16.vlgmr.msrb.gmra.mxu1 %v3280_v24  ;;  %v3502_v13 = vor.u32 %v4306_v8, %v3501_v7  ;;  %v3642_v7 = vld [vmem:[%s4522_s17 + $0x27c] sm:$0xf]  ;;  %v4340_v8 = vld [vmem:[%s4522_s17 + $0x2b4] sm:$0xf0] }
  0x93   : > { %1372 = vmatpush.bf16.msra.mxu1 %v3473_v14  ;;  %1550 = vmatpush.bf16.msra.mxu2 %v3562_v15  ;;  %v4278_v14 = vld [vmem:[%s4522_s17 + $0x90] sm:$0xf]  ;;  %v3394_v15 = vld [vmem:[%s4522_s17 + $0xc8] sm:$0xf0] }
  0x94   : > { %1563 = vmatpush.bf16.msra.mxu3 %v3566_v19  ;;  %1176 = vmatmul.bf16.vlgmr.msrb.gmra.mxu2 %v3280_v24  ;;  %v3489_v19 = vld [vmem:[%s4522_s17 + $0x90] sm:$0xf]  ;;  %v3397_v24 = vor.u32 %v4278_v14, %v3394_v15  ;;  %v3643_v14 = vor.u32 %v4340_v8, %v3642_v7  ;;  %v4336_v15 = vld [vmem:[%s4522_s17 + $0x234] sm:$0xf0]  ;;  %v4323_v8 = vld [vmem:[%s4522_s17 + $0x20] sm:$0xf] }
  0x95   : > { %1354 = vmatmul.bf16.vlgmr.msrb.gmra.mxu3 %v4824_v27  ;;  %v4324_v7 = vld [vmem:[%s4522_s17 + $0x54] sm:$0xf0] }
  0x96   : > { %1360 = vmatpush.bf16.msra.mxu0 %v3457_v28  ;;  %v3401_v28 = vor.u32 %v4280_v18, %v3400_v16  ;;  %v4335_v16 = vld [vmem:[%s4522_s17 + $0x200] sm:$0xf]  ;;  %v3630_v18 = vld [vmem:[%s4522_s17 + $0x204] sm:$0xf] }
  0x97   : > { %1373 = vmatpush.bf16.msra.mxu1 %v3461_v29  ;;  %1551 = vmatpush.bf16.msra.mxu2 %v3550_v30  ;;  %v3490_v29 = vor.u32 %v4303_v20, %v3489_v19  ;;  %v3388_v30 = vld [vmem:[%s4522_s17 + $0x1c] sm:$0xf]  ;;  %v4337_v19 = vld [vmem:[%s4522_s17 + $0x23c] sm:$0xf0] }
  0x98   : > { %1564 = vmatpush.bf16.msra.mxu3 %v3554_v34  ;;  %v4300_v34 = vld [vmem:[%s4522_s17 + $0x50] sm:$0xf0]  ;;  %v3389_v44 = vor.u32 %v4277_v31, %v3388_v30  ;;  %v3631_v30 = vor.u32 %v4337_v19, %v3630_v18  ;;  %v4333_v31 = vld [vmem:[%s4522_s17 + $0x1bc] sm:$0xf0]  ;;  %v3757_v18 = vld [vmem:[%s4522_s17 + $0x3a4] sm:$0xf0] }
  0x99   : > { %v3478_v45 = vor.u32 %v4300_v34, %v3477_v32  ;;  %v4332_v32 = vld [vmem:[%s4522_s17 + $0x188] sm:$0xf]  ;;  %v3618_v34 = vld [vmem:[%s4522_s17 + $0x18c] sm:$0xf]  ;;  %v3763_v19 = vld [vmem:[%s4522_s17 + $0x370] sm:$0xf] }
  0x9a   : > { %1361 = vmatpush.bf16.msra.mxu0 %v3445_v40  ;;  %v3385_v40 = vor.u32 %v4275_v25, %v3382_v26  ;;  %v3521_v25 = vld [vmem:[%s4522_s17 + $0x188] sm:$0xf]  ;;  %v4310_v26 = vld [vmem:[%s4522_s17 + $0x1c0] sm:$0xf0] }
  0x9b   : > { %1374 = vmatpush.bf16.msra.mxu1 %v3449_v41  ;;  %1552 = vmatpush.bf16.msra.mxu2 %v3538_v42  ;;  %v4345_v41 = vld [vmem:[%s4522_s17 + $0x39c] sm:$0xf0]  ;;  %v4344_v42 = vld [vmem:[%s4522_s17 + $0x368] sm:$0xf]  ;;  %v3522_v36 = vor.u32 %v4310_v26, %v3521_v25 }
  0x9c   : > { %1565 = vmatpush.bf16.msra.mxu3 %v3542_v54  ;;  %v3666_v54 = vld [vmem:[%s4522_s17 + $0x36c] sm:$0xf]  ;;  %v3659_v49 = vor.u32 %v4345_v41, %v3658_v39  ;;  %v3663_v50 = vor.u32 %v4344_v42, %v3660_v43  ;;  %v3509_v39 = vld [vmem:[%s4522_s17 + $0x110] sm:$0xf]  ;;  %v3619_v43 = vor.u32 %v4334_v35, %v3618_v34  ;;  %v4393_v25 = vld [vmem:[%s4522_s17 + $0x3a4] sm:$0xf0] }
  0x9d   : > { %v3667_v55 = vor.u32 %v4346_v46, %v3666_v54  ;;  %v3598_v41 = vld [vmem:[%s4522_s17 + $0x10c] sm:$0xf]  ;;  %v4365_v34 = vld [vmem:[%s4522_s17 + $0x2f4] sm:$0xf] }
  0x9e   : > { %1362 = vmatpush.bf16.msra.mxu0 %v3433_v51  ;;  %v3557_v51 = vld [vmem:[%s4522_s17 + $0x2f0] sm:$0xf]  ;;  %v3600_v54 = vld [vmem:[%s4522_s17 + $0x148] sm:$0xf0] }
  0x9f   : > { %1375 = vmatpush.bf16.msra.mxu1 %v3437_v52  ;;  %1553 = vmatpush.bf16.msra.mxu2 %v3526_v53  ;;  %v4319_v52 = vld [vmem:[%s4522_s17 + $0x328] sm:$0xf0] }
  0xa0   : > { %1566 = vmatpush.bf16.msra.mxu3 %v3530_v58  ;;  %v3646_v53 = vld [vmem:[%s4522_s17 + $0x2ec] sm:$0xf]  ;;  %v3558_v62 = vor.u32 %v4319_v52, %v3557_v51 }
  0xa1   : > { %v3648_v58 = vld [vmem:[%s4522_s17 + $0x328] sm:$0xf0]  ;;  %v3647_v63 = vor.u32 %v4342_v56, %v3646_v53  ;;  %v4304_v56 = vld [vmem:[%s4522_s17 + $0xd0] sm:$0xf0] }
  0xa2   : > { %1363 = vmatpush.bf16.msra.mxu0 %v3421_v0  ;;  %v3651_v0 = vor.u32 %v4341_v57, %v3648_v58  ;;  %v3586_v57 = vld [vmem:[%s4522_s17 + $0x94] sm:$0xf] }
  0xa3   : > { %1376 = vmatpush.bf16.msra.mxu1 %v3425_v1  ;;  %1554 = vmatpush.bf16.msra.mxu2 %v3514_v2  ;;  %v3545_v1 = vld [vmem:[%s4522_s17 + $0x278] sm:$0xf]  ;;  %v4316_v2 = vld [vmem:[%s4522_s17 + $0x2b0] sm:$0xf0]  ;;  %v3587_v5 = vor.u32 %v4327_v60, %v3586_v57  ;;  %v4359_v60 = vld [vmem:[%s4522_s17 + $0x204] sm:$0xf] }
  0xa4   : > { %1567 = vmatpush.bf16.msra.mxu3 %v3518_v6  ;;  %v4338_v6 = vld [vmem:[%s4522_s17 + $0x278] sm:$0xf]  ;;  %v3546_v9 = vor.u32 %v4316_v2, %v3545_v1 }
  0xa5   : > { %v4328_v1 = vld [vmem:[%s4522_s17 + $0xd4] sm:$0xf0] }
  0xa6   : > { %1364 = vmatpush.bf16.msra.mxu0 %v3409_v11  ;;  %v3639_v11 = vor.u32 %v4338_v6, %v3636_v21  ;;  %v3574_v21 = vld [vmem:[%s4522_s17 + $0x1c] sm:$0xf] }
  0xa7   : > { %1377 = vmatpush.bf16.msra.mxu1 %v3413_v12  ;;  %1555 = vmatpush.bf16.msra.mxu2 %v3502_v13  ;;  %v3533_v12 = vld [vmem:[%s4522_s17 + $0x200] sm:$0xf]  ;;  %v4313_v13 = vld [vmem:[%s4522_s17 + $0x238] sm:$0xf0] }
  0xa8   : > { %1568 = vmatpush.bf16.msra.mxu3 %v3506_v17  ;;  %v3624_v17 = vld [vmem:[%s4522_s17 + $0x238] sm:$0xf0]  ;;  %v3534_v20 = vor.u32 %v4313_v13, %v3533_v12  ;;  %v3582_v12 = vld [vmem:[%s4522_s17 + $0x24] sm:$0xf]  ;;  %v4325_v13 = vld [vmem:[%s4522_s17 + $0x5c] sm:$0xf0] }
  0xa9   : > { %v3583_v26 = vor.u32 %v4325_v13, %v3582_v12 }
  0xaa   : > { %1365 = vmatpush.bf16.msra.mxu0 %v3397_v24  ;;  %v3627_v24 = vor.u32 %v4335_v16, %v3624_v17  ;;  %v4368_v16 = vld [vmem:[%s4522_s17 + $0x36c] sm:$0xf] }
  0xab   : > { %1378 = vmatpush.bf16.msra.mxu1 %v3401_v28  ;;  %1556 = vmatpush.bf16.msra.mxu2 %v3490_v29  ;;  %v3610_v28 = vld [vmem:[%s4522_s17 + $0x184] sm:$0xf] }
  0xac   : > { %1569 = vmatpush.bf16.msra.mxu3 %v3494_v33  ;;  %v3612_v33 = vld [vmem:[%s4522_s17 + $0x1c0] sm:$0xf0]  ;;  %v3611_v37 = vor.u32 %v4333_v31, %v3610_v28 }
  0xad   : > { %v3615_v38 = vor.u32 %v4332_v32, %v3612_v33  ;;  %v3743_v32 = vld [vmem:[%s4522_s17 + $0x2f0] sm:$0xf]  ;;  %v4366_v33 = vld [vmem:[%s4522_s17 + $0x328] sm:$0xf0] }
  0xae   : > { %1366 = vmatpush.bf16.msra.mxu0 %v3385_v40  ;;  %v375_v22 = vpop.f32.mrf.mxu0  ;;  %v4307_v40 = vld [vmem:[%s4522_s17 + $0x148] sm:$0xf0] }
  0xaf   : > { %1379 = vmatpush.bf16.msra.mxu1 %v3389_v44  ;;  %1557 = vmatpush.bf16.msra.mxu2 %v3478_v45  ;;  %v4330_v44 = vld [vmem:[%s4522_s17 + $0x144] sm:$0xf0]  ;;  %v4329_v45 = vld [vmem:[%s4522_s17 + $0x110] sm:$0xf] }
  0xb0   : > { %1570 = vmatpush.bf16.msra.mxu3 %v3482_v47  ;;  %v3606_v47 = vld [vmem:[%s4522_s17 + $0x114] sm:$0xf]  ;;  %v3599_v52 = vor.u32 %v4330_v44, %v3598_v41  ;;  %v3603_v53 = vor.u32 %v4329_v45, %v3600_v54  ;;  %v3571_v41 = vld [vmem:[%s5267_s1 + $0x1c] sm:$0xf]  ;;  %v3731_v54 = vld [vmem:[%s4522_s17 + $0x278] sm:$0xf] }
  0xb1   : > { %1367 = vmatmul.bf16.vlgmr.msra.gmra.mxu0 %v4824_v27  ;;  %v4919_v29 = vpop.f32.mrf.mxu1 }
  0xb2   : > { %1576 = vmatpush.bf16.msrb.mxu0 %v3570_v48  ;;  %1380 = vmatmul.bf16.vlgmr.msra.gmra.mxu1 %v4824_v27  ;;  %v3622_v27 = vld [vmem:[%s4522_s17 + $0x1fc] sm:$0xf]  ;;  %v4331_v48 = vld [vmem:[%s4522_s17 + $0x14c] sm:$0xf0] }
  0xb3   : > { %1754 = vmatpush.bf16.msrb.mxu1 %v3659_v49  ;;  %1767 = vmatpush.bf16.msrb.mxu2 %v3663_v50  ;;  %v3623_v23 = vor.u32 %v4336_v15, %v3622_v27  ;;  %v3510_v50 = vor.u32 %v4307_v40, %v3509_v39  ;;  %v3607_v59 = vor.u32 %v4331_v48, %v3606_v47  ;;  %v4369_v15 = vld [vmem:[%s4522_s17 + $0x3a0] sm:$0xf0]  ;;  %v3840_v39 = vld [vmem:[%s4522_s17 + $0x2f4] sm:$0xf]  ;;  %v4390_v40 = vld [vmem:[%s4522_s17 + $0x32c] sm:$0xf0] }
  0xb4   : > { %1780 = vmatpush.bf16.msrb.mxu3 %v3667_v55  ;;  %1558 = vmatmul.bf16.vlgmr.msra.gmra.mxu2 %v4894_v61  ;;  %v3497_v55 = vld [vmem:[%s4522_s17 + $0x98] sm:$0xf]  ;;  %v4362_v47 = vld [vmem:[%s4522_s17 + $0x27c] sm:$0xf]  ;;  %v3841_v48 = vor.u32 %v4390_v40, %v3840_v39  ;;  %v4351_v39 = vld [vmem:[%s4522_s17 + $0xd0] sm:$0xf0] }
  0xb5   : > { %1571 = vmatmul.bf16.vlgmr.msra.gmra.mxu3 %v4894_v61  ;;  %v4929_v42 = vpop.f32.mrf.mxu2  ;;  %v3498_v2 = vor.u32 %v4304_v56, %v3497_v55  ;;  %v4387_v55 = vld [vmem:[%s4522_s17 + $0x2b4] sm:$0xf0]  ;;  %v4350_v40 = vld [vmem:[%s4522_s17 + $0x9c] sm:$0xf] }
  0xb6   : > { %1577 = vmatpush.bf16.msrb.mxu0 %v3558_v62  ;;  %v377_v51 = vpop.f32.mrf.mxu0  ;;  %v4326_v62 = vld [vmem:[%s4522_s17 + $0x98] sm:$0xf] }
  0xb7   : > { %1755 = vmatpush.bf16.msrb.mxu1 %v3647_v63  ;;  %1768 = vmatpush.bf16.msrb.mxu2 %v3651_v0  ;;  %v3588_v63 = vld [vmem:[%s4522_s17 + $0xd0] sm:$0xf0]  ;;  %v3594_v0 = vld [vmem:[%s4522_s17 + $0x9c] sm:$0xf]  ;;  %v3739_v51 = vld [vmem:[%s4522_s17 + $0x280] sm:$0xf] }
  0xb8   : > { %1781 = vmatpush.bf16.msrb.mxu3 %v3655_v4  ;;  %v542_v46 = vpop.f32.mrf.mxu3  ;;  %v4301_v4 = vld [vmem:[%s4522_s17 + $0x58] sm:$0xf0]  ;;  %v3591_v6 = vor.u32 %v4326_v62, %v3588_v63  ;;  %v3721_v63 = vld [vmem:[%s4522_s17 + $0x23c] sm:$0xf0] }
  0xb9   : > { %v4936_v49 = vadd.f32 %v542_v46, %v375_v22  ;;  %v390_v58 = vpop.f32.mrf.mxu1  ;;  %v3486_v17 = vor.u32 %v4301_v4, %v3485_v3  ;;  %v3575_v22 = vor.u32 %v4324_v7, %v3574_v21  ;;  %v4363_v46 = vld [vmem:[%s4522_s17 + $0x2b0] sm:$0xf0]  ;;  %v4384_v3 = vld [vmem:[%s4522_s17 + $0x23c] sm:$0xf0] }
  0xba   : > { %1578 = vmatpush.bf16.msrb.mxu0 %v3546_v9  ;;  %v3732_v56 = vor.u32 %v4363_v46, %v3731_v54  ;;  %v3719_v58 = vld [vmem:[%s4522_s17 + $0x200] sm:$0xf]  ;;  %v4352_v54 = vld [vmem:[%s4522_s17 + $0xd8] sm:$0xf0] }
  0xbb   : > { %1756 = vmatpush.bf16.msrb.mxu1 %v3635_v10  ;;  %1769 = vmatpush.bf16.msrb.mxu2 %v3639_v11  ;;  %v3595_v10 = vor.u32 %v4328_v1, %v3594_v0  ;;  %v3576_v11 = vld [vmem:[%s4522_s17 + $0x58] sm:$0xf0]  ;;  %v3727_v0 = vld [vmem:[%s4522_s17 + $0x208] sm:$0xf]  ;;  %v4361_v1 = vld [vmem:[%s4522_s17 + $0x240] sm:$0xf0] }
  0xbc   : > { %1782 = vmatpush.bf16.msrb.mxu3 %v3643_v14  ;;  %v3755_v14 = vld [vmem:[%s4522_s17 + $0x368] sm:$0xf]  ;;  %v3728_v21 = vor.u32 %v4361_v1, %v3727_v0  ;;  %v3780_v46 = vld [vmem:[%s4522_s17 + $0x9c] sm:$0xf]  ;;  %v4392_v0 = vld [vmem:[%s4522_s17 + $0x370] sm:$0xf] }
  0xbd   : > { %v403_v9 = vpop.f32.mrf.mxu2  ;;  %v3756_v28 = vor.u32 %v4369_v15, %v3755_v14  ;;  %v3715_v14 = vld [vmem:[%s4522_s17 + $0x190] sm:$0xf]  ;;  %v4358_v15 = vld [vmem:[%s4522_s17 + $0x1c8] sm:$0xf0] }
  0xbe   : > { %1579 = vmatpush.bf16.msrb.mxu0 %v3534_v20  ;;  %v4370_v20 = vld [vmem:[%s4522_s17 + $0x3a8] sm:$0xf0]  ;;  %v3707_v9 = vld [vmem:[%s4522_s17 + $0x188] sm:$0xf] }
  0xbf   : > { %1757 = vmatpush.bf16.msrb.mxu1 %v3623_v23  ;;  %1770 = vmatpush.bf16.msrb.mxu2 %v3627_v24  ;;  %v3579_v23 = vor.u32 %v4323_v8, %v3576_v11  ;;  %v3852_v24 = vld [vmem:[%s4522_s17 + $0x36c] sm:$0xf]  ;;  %v3764_v31 = vor.u32 %v4370_v20, %v3763_v19  ;;  %v3716_v19 = vor.u32 %v4358_v15, %v3715_v14  ;;  %v4389_v14 = vld [vmem:[%s4522_s17 + $0x2f8] sm:$0xf]  ;;  %v3842_v15 = vld [vmem:[%s4522_s17 + $0x330] sm:$0xf0] }
  0xc0   : > { %1783 = vmatpush.bf16.msrb.mxu3 %v3631_v30  ;;  %v544_v27 = vpop.f32.mrf.mxu3  ;;  %v3760_v30 = vor.u32 %v4368_v16, %v3757_v18  ;;  %v3853_v35 = vor.u32 %v4393_v25, %v3852_v24  ;;  %v4356_v11 = vld [vmem:[%s4522_s17 + $0x18c] sm:$0xf] }
  0xc1   : > { %v3709_v27 = vld [vmem:[%s4522_s17 + $0x1c4] sm:$0xf0]  ;;  %v3804_v16 = vld [vmem:[%s4522_s17 + $0x18c] sm:$0xf] }
  0xc2   : > { %1580 = vmatpush.bf16.msrb.mxu0 %v3522_v36  ;;  %v3745_v36 = vld [vmem:[%s4522_s17 + $0x32c] sm:$0xf0]  ;;  %v3712_v18 = vor.u32 %v4356_v11, %v3709_v27  ;;  %v3854_v1 = vld [vmem:[%s4522_s17 + $0x3a8] sm:$0xf0] }
  0xc3   : > { %1758 = vmatpush.bf16.msrb.mxu1 %v3611_v37  ;;  %1771 = vmatpush.bf16.msrb.mxu2 %v3615_v38  ;;  %v3751_v37 = vld [vmem:[%s4522_s17 + $0x2f8] sm:$0xf]  ;;  %v4367_v38 = vld [vmem:[%s4522_s17 + $0x330] sm:$0xf0]  ;;  %v3748_v44 = vor.u32 %v4365_v34, %v3745_v36  ;;  %v4378_v34 = vld [vmem:[%s4522_s17 + $0x14c] sm:$0xf0]  ;;  %v3857_v11 = vor.u32 %v4392_v0, %v3854_v1 }
  0xc4   : > { %1784 = vmatpush.bf16.msrb.mxu3 %v3619_v43  ;;  %v3744_v43 = vor.u32 %v4366_v33, %v3743_v32  ;;  %v3752_v45 = vor.u32 %v4367_v38, %v3751_v37  ;;  %v3792_v33 = vld [vmem:[%s4522_s17 + $0x114] sm:$0xf]  ;;  %v3683_v38 = vld [vmem:[%s4522_s17 + $0x98] sm:$0xf]  ;;  %v3901_v0 = vld [vmem:[%s4522_s17 + $0x190] sm:$0xf] }
  0xc5   : > { %v4405_v1 = vld [vmem:[%s4522_s17 + $0x1c8] sm:$0xf0] }
  0xc6   : > { %1581 = vmatpush.bf16.msrb.mxu0 %v3510_v50  ;;  %v3733_v50 = vld [vmem:[%s4522_s17 + $0x2b4] sm:$0xf0] }
  0xc7   : > { %1759 = vmatpush.bf16.msrb.mxu1 %v3599_v52  ;;  %1772 = vmatpush.bf16.msrb.mxu2 %v3603_v53  ;;  %v4364_v52 = vld [vmem:[%s4522_s17 + $0x2b8] sm:$0xf0] }
  0xc8   : > { %1785 = vmatpush.bf16.msrb.mxu3 %v3607_v59  ;;  %v3828_v53 = vld [vmem:[%s4522_s17 + $0x27c] sm:$0xf]  ;;  %v3740_v57 = vor.u32 %v4364_v52, %v3739_v51 }
  0xc9   : > { %v4360_v59 = vld [vmem:[%s4522_s17 + $0x238] sm:$0xf0]  ;;  %v3829_v62 = vor.u32 %v4387_v55, %v3828_v53  ;;  %v4347_v55 = vld [vmem:[%s4522_s17 + $0x24] sm:$0xf] }
  0xca   : > { %1582 = vmatpush.bf16.msrb.mxu0 %v3498_v2  ;;  %v3816_v2 = vld [vmem:[%s4522_s17 + $0x204] sm:$0xf]  ;;  %v3720_v4 = vor.u32 %v4360_v59, %v3719_v58  ;;  %v4348_v51 = vld [vmem:[%s4522_s17 + $0x58] sm:$0xf0] }
  0xcb   : > { %1760 = vmatpush.bf16.msrb.mxu1 %v3587_v5  ;;  %1773 = vmatpush.bf16.msrb.mxu2 %v3591_v6  ;;  %v3724_v6 = vor.u32 %v4359_v60, %v3721_v63  ;;  %v3817_v12 = vor.u32 %v4384_v3, %v3816_v2  ;;  %v4349_v59 = vld [vmem:[%s4522_s17 + $0x60] sm:$0xf0]  ;;  %v3860_v2 = vld [vmem:[%s4522_s17 + $0x374] sm:$0xf] }
  0xcc   : > { %1786 = vmatpush.bf16.msrb.mxu3 %v3595_v10  ;;  %v4357_v10 = vld [vmem:[%s4522_s17 + $0x1c0] sm:$0xf0] }
  0xcd   : > { %v3768_v60 = vld [vmem:[%s4522_s17 + $0x24] sm:$0xf] }
  0xce   : > { %1583 = vmatpush.bf16.msrb.mxu0 %v3486_v17  ;;  %v555_v5 = vpop.f32.mrf.mxu0  ;;  %v4381_v17 = vld [vmem:[%s4522_s17 + $0x1c4] sm:$0xf0] }
  0xcf   : > { %1761 = vmatpush.bf16.msrb.mxu1 %v3575_v22  ;;  %1774 = vmatpush.bf16.msrb.mxu2 %v3579_v23  ;;  %v556_v7 = vadd.f32 %v555_v5, %v4919_v29  ;;  %v3708_v29 = vor.u32 %v4357_v10, %v3707_v9  ;;  %v3695_v22 = vld [vmem:[%s4522_s17 + $0x110] sm:$0xf]  ;;  %v4353_v23 = vld [vmem:[%s4522_s17 + $0x114] sm:$0xf]  ;;  %v3805_v24 = vor.u32 %v4381_v17, %v3804_v16  ;;  %v3848_v16 = vld [vmem:[%s4522_s17 + $0x2fc] sm:$0xf] }
  0xd0   : > { %1787 = vmatpush.bf16.msrb.mxu3 %v3583_v26  ;;  %v3949_v5 = vld [vmem:[%s4522_s17 + $0x370] sm:$0xf] }
  0xd1   : > { %1584 = vmatmul.bf16.vlgmr.msrb.gmra.mxu0 %v4894_v61  ;;  %v3736_v61 = vor.u32 %v4362_v47, %v3733_v50  ;;  %v568_v8 = vpop.f32.mrf.mxu1  ;;  %v4375_v47 = vld [vmem:[%s4522_s17 + $0xd4] sm:$0xf0]  ;;  %v3671_v50 = vld [vmem:[%s4522_s17 + $0x20] sm:$0xf]  ;;  %v3951_v9 = vld [vmem:[%s4522_s17 + $0x3ac] sm:$0xf0] }
  0xd2   : > { %1958 = vmatpush.bf16.msra.mxu0 %v3756_v28  ;;  %1762 = vmatmul.bf16.vlgmr.msrb.gmra.mxu1 %v3571_v41  ;;  %v4995_v13 = vadd.f32 %v568_v8, %v4929_v42  ;;  %v4354_v42 = vld [vmem:[%s4522_s17 + $0x148] sm:$0xf0]  ;;  %v3697_v28 = vld [vmem:[%s4522_s17 + $0x14c] sm:$0xf0]  ;;  %v3781_v58 = vor.u32 %v4375_v47, %v3780_v46  ;;  %v3672_v3 = vor.u32 %v4348_v51, %v3671_v50  ;;  %v4416_v8 = vld [vmem:[%s4522_s17 + $0x374] sm:$0xf] }
  0xd3   : > { %1971 = vmatpush.bf16.msra.mxu1 %v3760_v30  ;;  %1984 = vmatpush.bf16.msra.mxu2 %v3764_v31  ;;  %v3703_v30 = vld [vmem:[%s4522_s17 + $0x118] sm:$0xf]  ;;  %v4355_v31 = vld [vmem:[%s4522_s17 + $0x150] sm:$0xf0]  ;;  %v3954_v17 = vor.u32 %v4416_v8, %v3951_v9  ;;  %v4385_v46 = vld [vmem:[%s4522_s17 + $0x244] sm:$0xf0] }
  0xd4   : > { %2162 = vmatpush.bf16.msra.mxu3 %v3853_v35  ;;  %1775 = vmatmul.bf16.vlgmr.msrb.gmra.mxu2 %v3571_v41  ;;  %v3696_v35 = vor.u32 %v4354_v42, %v3695_v22  ;;  %v3704_v37 = vor.u32 %v4355_v31, %v3703_v30  ;;  %v4413_v22 = vld [vmem:[%s4522_s17 + $0x2fc] sm:$0xf]  ;;  %v3939_v42 = vld [vmem:[%s4522_s17 + $0x334] sm:$0xf0]  ;;  %v4386_v30 = vld [vmem:[%s4522_s17 + $0x280] sm:$0xf] }
  0xd5   : > { %1788 = vmatmul.bf16.vlgmr.msrb.gmra.mxu3 %v3571_v41  ;;  %v743_v20 = vpop.f32.mrf.mxu2  ;;  %v3830_v31 = vld [vmem:[%s4522_s17 + $0x2b8] sm:$0xf0]  ;;  %v3913_v47 = vld [vmem:[%s4522_s17 + $0x208] sm:$0xf]  ;;  %v4407_v51 = vld [vmem:[%s4522_s17 + $0x20c] sm:$0xf] }
  0xd6   : > { %1959 = vmatpush.bf16.msra.mxu0 %v3744_v43  ;;  %v5006_v25 = vadd.f32 %v743_v20, %v4936_v49  ;;  %v557_v36 = vpop.f32.mrf.mxu0  ;;  %v3700_v49 = vor.u32 %v4353_v23, %v3697_v28  ;;  %v3793_v43 = vor.u32 %v4378_v34, %v3792_v33  ;;  %v3668_v20 = vld [vmem:[%s5267_s1 + $0x20] sm:$0xf]  ;;  %v5053_v23 = vld [vmem:[%s5267_s1 + $0x24] sm:$0xf]  ;;  %v3942_v34 = vor.u32 %v4413_v22, %v3939_v42  ;;  %v3782_v42 = vld [vmem:[%s4522_s17 + $0xd8] sm:$0xf0] }
  0xd7   : > { %1972 = vmatpush.bf16.msra.mxu1 %v3748_v44  ;;  %1985 = vmatpush.bf16.msra.mxu2 %v3752_v45  ;;  %v3685_v44 = vld [vmem:[%s4522_s17 + $0xd4] sm:$0xf0]  ;;  %v3691_v45 = vld [vmem:[%s4522_s17 + $0xa0] sm:$0xf]  ;;  %v3836_v33 = vld [vmem:[%s4522_s17 + $0x284] sm:$0xf] }
  0xd8   : > { %2163 = vmatpush.bf16.msra.mxu3 %v3841_v48  ;;  %v756_v26 = vpop.f32.mrf.mxu3  ;;  %v3684_v48 = vor.u32 %v4351_v39, %v3683_v38  ;;  %v3688_v52 = vor.u32 %v4350_v40, %v3685_v44  ;;  %v3692_v53 = vor.u32 %v4352_v54, %v3691_v45  ;;  %v3925_v36 = vld [vmem:[%s4522_s17 + $0x280] sm:$0xf]  ;;  %v3833_v39 = vor.u32 %v4386_v30, %v3830_v31  ;;  %v3818_v44 = vld [vmem:[%s4522_s17 + $0x240] sm:$0xf0]  ;;  %v3824_v45 = vld [vmem:[%s4522_s17 + $0x20c] sm:$0xf] }
  0xd9   : > { %v5011_v32 = vadd.f32 %v756_v26, %v556_v7  ;;  %v570_v41 = vpop.f32.mrf.mxu1  ;;  %v3927_v38 = vld [vmem:[%s4522_s17 + $0x2bc] sm:$0xf0]  ;;  %v4399_v31 = vld [vmem:[%s4522_s17 + $0xd8] sm:$0xf0] }
  0xda   : > { %1960 = vmatpush.bf16.msra.mxu0 %v3732_v56  ;;  %v3673_v56 = vld [vmem:[%s4522_s17 + $0x5c] sm:$0xf0] }
  0xdb   : > { %1973 = vmatpush.bf16.msra.mxu1 %v3736_v61  ;;  %1986 = vmatpush.bf16.msra.mxu2 %v3740_v57  ;;  %v3679_v61 = vld [vmem:[%s4522_s17 + $0x28] sm:$0xf]  ;;  %v4374_v22 = vld [vmem:[%s4522_s17 + $0xa0] sm:$0xf] }
  0xdc   : > { %2164 = vmatpush.bf16.msra.mxu3 %v3829_v62  ;;  %v4372_v62 = vld [vmem:[%s4522_s17 + $0x5c] sm:$0xf0]  ;;  %v3680_v7 = vor.u32 %v4349_v59, %v3679_v61  ;;  %v4380_v59 = vld [vmem:[%s4522_s17 + $0x190] sm:$0xf] }
  0xdd   : > { %v745_v57 = vpop.f32.mrf.mxu2  ;;  %v3769_v10 = vor.u32 %v4372_v62, %v3768_v60  ;;  %v3806_v60 = vld [vmem:[%s4522_s17 + $0x1c8] sm:$0xf0]  ;;  %v3812_v62 = vld [vmem:[%s4522_s17 + $0x194] sm:$0xf]  ;;  %v3877_v30 = vld [vmem:[%s4522_s17 + $0xa0] sm:$0xf] }
  0xde   : > { %1961 = vmatpush.bf16.msra.mxu0 %v3720_v4  ;;  %v4394_v4 = vld [vmem:[%s4522_s17 + $0x3ac] sm:$0xf0]  ;;  %v3825_v57 = vor.u32 %v4385_v46, %v3824_v45  ;;  %v4395_v45 = vld [vmem:[%s4522_s17 + $0x2c] sm:$0xf] }
  0xdf   : > { %1974 = vmatpush.bf16.msra.mxu1 %v3724_v6  ;;  %1987 = vmatpush.bf16.msra.mxu2 %v3728_v21  ;;  %v4417_v6 = vld [vmem:[%s4522_s17 + $0x3a8] sm:$0xf0]  ;;  %v3676_v21 = vor.u32 %v4347_v55, %v3673_v56 }
  0xe0   : > { %2165 = vmatpush.bf16.msra.mxu3 %v3817_v12  ;;  %v758_v63 = vpop.f32.mrf.mxu3  ;;  %v3861_v12 = vor.u32 %v4394_v4, %v3860_v2  ;;  %v3950_v27 = vor.u32 %v4417_v6, %v3949_v5  ;;  %v4404_v2 = vld [vmem:[%s4522_s17 + $0x194] sm:$0xf]  ;;  %v3902_v5 = vor.u32 %v4405_v1, %v3901_v0  ;;  %v4377_v6 = vld [vmem:[%s4522_s17 + $0x118] sm:$0xf]  ;;  %v3945_v1 = vld [vmem:[%s4522_s17 + $0x300] sm:$0xf] }
  0xe2   : > { %1962 = vmatpush.bf16.msra.mxu0 %v3708_v29  ;;  %v4391_v29 = vld [vmem:[%s4522_s17 + $0x334] sm:$0xf0] }
  0xe3   : > { %1975 = vmatpush.bf16.msra.mxu1 %v3712_v18  ;;  %1988 = vmatpush.bf16.msra.mxu2 %v3716_v19  ;;  %v3937_v18 = vld [vmem:[%s4522_s17 + $0x2f8] sm:$0xf]  ;;  %v4414_v19 = vld [vmem:[%s4522_s17 + $0x330] sm:$0xf0]  ;;  %v3849_v26 = vor.u32 %v4391_v29, %v3848_v16 }
  0xe4   : > { %2166 = vmatpush.bf16.msra.mxu3 %v3805_v24  ;;  %v3845_v24 = vor.u32 %v4389_v14, %v3842_v15  ;;  %v3938_v28 = vor.u32 %v4414_v19, %v3937_v18  ;;  %v4401_v15 = vld [vmem:[%s4522_s17 + $0x11c] sm:$0xf]  ;;  %v3891_v16 = vld [vmem:[%s4522_s17 + $0x154] sm:$0xf0] }
  0xe6   : > { %1963 = vmatpush.bf16.msra.mxu0 %v3696_v35  ;;  %v4388_v35 = vld [vmem:[%s4522_s17 + $0x2bc] sm:$0xf0] }
  0xe7   : > { %1976 = vmatpush.bf16.msra.mxu1 %v3700_v49  ;;  %1989 = vmatpush.bf16.msra.mxu2 %v3704_v37  ;;  %v4411_v49 = vld [vmem:[%s4522_s17 + $0x2b8] sm:$0xf0]  ;;  %v4410_v37 = vld [vmem:[%s4522_s17 + $0x284] sm:$0xf]  ;;  %v3837_v40 = vor.u32 %v4388_v35, %v3836_v33  ;;  %v3785_v35 = vor.u32 %v4374_v22, %v3782_v42 }
  0xe8   : > { %2167 = vmatpush.bf16.msra.mxu3 %v3793_v43  ;;  %v3926_v41 = vor.u32 %v4411_v49, %v3925_v36  ;;  %v4383_v43 = vld [vmem:[%s4522_s17 + $0x208] sm:$0xf]  ;;  %v3930_v54 = vor.u32 %v4410_v37, %v3927_v38  ;;  %v4398_v33 = vld [vmem:[%s4522_s17 + $0xa4] sm:$0xf]  ;;  %v3878_v38 = vor.u32 %v4399_v31, %v3877_v30 }
  0xe9   : > { %v3821_v56 = vor.u32 %v4383_v43, %v3818_v44  ;;  %v4371_v36 = vld [vmem:[%s4522_s17 + $0x28] sm:$0xf]  ;;  %v3770_v49 = vld [vmem:[%s4522_s17 + $0x60] sm:$0xf0] }
  0xea   : > { %1964 = vmatpush.bf16.msra.mxu0 %v3684_v48  ;;  %v4408_v48 = vld [vmem:[%s4522_s17 + $0x240] sm:$0xf0]  ;;  %v4432_v31 = vld [vmem:[%s4522_s17 + $0x244] sm:$0xf0] }
  0xeb   : > { %1977 = vmatpush.bf16.msra.mxu1 %v3688_v52  ;;  %1990 = vmatpush.bf16.msra.mxu2 %v3692_v53  ;;  %v3915_v52 = vld [vmem:[%s4522_s17 + $0x244] sm:$0xf0]  ;;  %v4396_v44 = vld [vmem:[%s4522_s17 + $0x60] sm:$0xf0] }
  0xec   : > { %2168 = vmatpush.bf16.msra.mxu3 %v3781_v58  ;;  %v3914_v58 = vor.u32 %v4408_v48, %v3913_v47  ;;  %v3918_v63 = vor.u32 %v4407_v51, %v3915_v52  ;;  %v3957_v47 = vld [vmem:[%s4522_s17 + $0x378] sm:$0xf]  ;;  %v4418_v48 = vld [vmem:[%s4522_s17 + $0x3b0] sm:$0xf0]  ;;  %v3773_v52 = vor.u32 %v4371_v36, %v3770_v49  ;;  %v4433_v49 = vld [vmem:[%s4522_s17 + $0x24c] sm:$0xf0] }
  0xed   : > { %v4018_v36 = vld [vmem:[%s4522_s17 + $0x214] sm:$0xf] }
  0xee   : > { %1965 = vmatpush.bf16.msra.mxu0 %v3672_v3  ;;  %v769_v50 = vpop.f32.mrf.mxu0  ;;  %v3903_v3 = vld [vmem:[%s4522_s17 + $0x1cc] sm:$0xf0] }
  0xef   : > { %1978 = vmatpush.bf16.msra.mxu1 %v3676_v21  ;;  %1991 = vmatpush.bf16.msra.mxu2 %v3680_v7  ;;  %v775_v53 = vadd.f32 %v769_v50, %v4995_v13  ;;  %v947_v55 = vpop.f32.mrf.mxu1  ;;  %v4382_v13 = vld [vmem:[%s4522_s17 + $0x1cc] sm:$0xf0]  ;;  %v3794_v21 = vld [vmem:[%s4522_s17 + $0x150] sm:$0xf0]  ;;  %v3800_v7 = vld [vmem:[%s4522_s17 + $0x11c] sm:$0xf]  ;;  %v3906_v8 = vor.u32 %v4404_v2, %v3903_v3 }
  0xf0   : > { %2169 = vmatpush.bf16.msra.mxu3 %v3769_v10  ;;  %v5074_v61 = vadd.f32 %v947_v55, %v5006_v25  ;;  %v3809_v25 = vor.u32 %v4380_v59, %v3806_v60  ;;  %v3813_v4 = vor.u32 %v4382_v13, %v3812_v62  ;;  %v4379_v10 = vld [vmem:[%s4522_s17 + $0x154] sm:$0xf0]  ;;  %v3797_v18 = vor.u32 %v4377_v6, %v3794_v21  ;;  %v4046_v50 = vld [vmem:[%s4522_s17 + $0x374] sm:$0xf]  ;;  %v4054_v59 = vld [vmem:[%s4522_s17 + $0x37c] sm:$0xf] }
  0xf1   : > { %1966 = vmatmul.bf16.vlgmr.msra.gmra.mxu0 %v3668_v20  ;;  %v4440_v55 = vld [vmem:[%s4522_s17 + $0x378] sm:$0xf]  ;;  %v4415_v2 = vld [vmem:[%s4522_s17 + $0x338] sm:$0xf0]  ;;  %v4042_v21 = vld [vmem:[%s4522_s17 + $0x304] sm:$0xf] }
  0xf2   : > { %2175 = vmatpush.bf16.msrb.mxu0 %v3857_v11  ;;  %1979 = vmatmul.bf16.vlgmr.msra.gmra.mxu1 %v3668_v20  ;;  %v3889_v11 = vld [vmem:[%s4522_s17 + $0x118] sm:$0xf]  ;;  %v4034_v3 = vld [vmem:[%s4522_s17 + $0x2fc] sm:$0xf] }
  0xf3   : > { %2188 = vmatpush.bf16.msrb.mxu1 %v3861_v12  ;;  %2366 = vmatpush.bf16.msrb.mxu2 %v3950_v27  ;;  %v4402_v12 = vld [vmem:[%s4522_s17 + $0x150] sm:$0xf0]  ;;  %v4442_v60 = vld [vmem:[%s4522_s17 + $0x3b4] sm:$0xf0]  ;;  %v4036_v6 = vld [vmem:[%s4522_s17 + $0x338] sm:$0xf0] }
  0xf4   : > { %2379 = vmatpush.bf16.msrb.mxu3 %v3954_v17  ;;  %1992 = vmatmul.bf16.vlgmr.msra.gmra.mxu2 %v3668_v20  ;;  %v3890_v20 = vor.u32 %v4402_v12, %v3889_v11  ;;  %v3933_v12 = vld [vmem:[%s4522_s17 + $0x288] sm:$0xf] }
  0xf5   : > { %2170 = vmatmul.bf16.vlgmr.msra.gmra.mxu3 %v5053_v23 }
  0xf6   : > { %2176 = vmatpush.bf16.msrb.mxu0 %v3845_v24  ;;  %v771_v17 = vpop.f32.mrf.mxu0  ;;  %v3788_v24 = vld [vmem:[%s4522_s17 + $0xa4] sm:$0xf] }
  0xf7   : > { %2189 = vmatpush.bf16.msrb.mxu1 %v3849_v26  ;;  %2367 = vmatpush.bf16.msrb.mxu2 %v3938_v28  ;;  %v960_v9 = vpop.f32.mrf.mxu2  ;;  %v949_v19 = vpop.f32.mrf.mxu1  ;;  %v3894_v26 = vor.u32 %v4401_v15, %v3891_v16  ;;  %v4376_v28 = vld [vmem:[%s4522_s17 + $0xdc] sm:$0xf0]  ;;  %v4022_v15 = vld [vmem:[%s4522_s17 + $0x284] sm:$0xf] }
  0xf8   : > { %2380 = vmatpush.bf16.msrb.mxu3 %v3942_v34  ;;  %v5091_v27 = vadd.f32 %v960_v9, %v5011_v32  ;;  %v973_v14 = vpop.f32.mrf.mxu3  ;;  %v3801_v32 = vor.u32 %v4379_v10, %v3800_v7  ;;  %v3879_v34 = vld [vmem:[%s4522_s17 + $0xdc] sm:$0xf0]  ;;  %v3789_v37 = vor.u32 %v4376_v28, %v3788_v24  ;;  %v3946_v9 = vor.u32 %v4415_v2, %v3945_v1  ;;  %v4024_v19 = vld [vmem:[%s4522_s17 + $0x2c0] sm:$0xf0]  ;;  %v4409_v28 = vld [vmem:[%s4522_s17 + $0x248] sm:$0xf0] }
  0xf9   : > { %v5095_v29 = vadd.f32 %v973_v14, %v775_v53  ;;  %v3882_v43 = vor.u32 %v4398_v33, %v3879_v34  ;;  %v4441_v53 = vld [vmem:[%s4522_s17 + $0x3ac] sm:$0xf0]  ;;  %v4439_v7 = vld [vmem:[%s4522_s17 + $0x33c] sm:$0xf0]  ;;  %v4412_v14 = vld [vmem:[%s4522_s17 + $0x2c0] sm:$0xf0] }
  0xfa   : > { %2177 = vmatpush.bf16.msrb.mxu0 %v3833_v39  ;;  %v3776_v39 = vld [vmem:[%s4522_s17 + $0x2c] sm:$0xf]  ;;  %v4047_v13 = vor.u32 %v4441_v53, %v4046_v50  ;;  %v4043_v16 = vor.u32 %v4439_v7, %v4042_v21  ;;  %v4435_v17 = vld [vmem:[%s4522_s17 + $0x2bc] sm:$0xf0]  ;;  %v3934_v22 = vor.u32 %v4412_v14, %v3933_v12  ;;  %v4431_v33 = vld [vmem:[%s4522_s17 + $0x210] sm:$0xf] }
  0xfb   : > { %2190 = vmatpush.bf16.msrb.mxu1 %v3837_v40  ;;  %2368 = vmatpush.bf16.msrb.mxu2 %v3926_v41  ;;  %v4373_v40 = vld [vmem:[%s4522_s17 + $0x64] sm:$0xf0]  ;;  %v4023_v42 = vor.u32 %v4435_v17, %v4022_v15  ;;  %v4012_v34 = vld [vmem:[%s4522_s17 + $0x248] sm:$0xf0]  ;;  %v4006_v50 = vld [vmem:[%s4522_s17 + $0x19c] sm:$0xf] }
  0xfc   : > { %2381 = vmatpush.bf16.msrb.mxu3 %v3930_v54  ;;  %v3865_v41 = vld [vmem:[%s4522_s17 + $0x28] sm:$0xf]  ;;  %v3994_v1 = vld [vmem:[%s4522_s17 + $0x124] sm:$0xf]  ;;  %v4427_v2 = vld [vmem:[%s4522_s17 + $0x15c] sm:$0xf0] }
  0xfd   : > { %v3867_v54 = vld [vmem:[%s4522_s17 + $0x64] sm:$0xf0]  ;;  %v4400_v7 = vld [vmem:[%s4522_s17 + $0xe0] sm:$0xf0]  ;;  %v3982_v15 = vld [vmem:[%s4522_s17 + $0xac] sm:$0xf] }
  0xfe   : > { %2178 = vmatpush.bf16.msrb.mxu0 %v3821_v56  ;;  %v4048_v56 = vld [vmem:[%s4522_s17 + $0x3b0] sm:$0xf0]  ;;  %v3870_v62 = vor.u32 %v4395_v45, %v3867_v54  ;;  %v3885_v21 = vld [vmem:[%s4522_s17 + $0xa8] sm:$0xf]  ;;  %v3976_v14 = vld [vmem:[%s4522_s17 + $0xe0] sm:$0xf0] }
  0xff   : > { %2191 = vmatpush.bf16.msrb.mxu1 %v3825_v57  ;;  %2369 = vmatpush.bf16.msrb.mxu2 %v3914_v58  ;;  %v962_v46 = vpop.f32.mrf.mxu2  ;;  %v3777_v57 = vor.u32 %v4373_v40, %v3776_v39  ;;  %v3866_v58 = vor.u32 %v4396_v44, %v3865_v41  ;;  %v4051_v0 = vor.u32 %v4440_v55, %v4048_v56  ;;  %v3909_v44 = vld [vmem:[%s4522_s17 + $0x198] sm:$0xf]  ;;  %v4406_v45 = vld [vmem:[%s4522_s17 + $0x1d0] sm:$0xf0]  ;;  %v3897_v55 = vld [vmem:[%s4522_s17 + $0x120] sm:$0xf] }
 0x100   : > { %2382 = vmatpush.bf16.msrb.mxu3 %v3918_v63  ;;  %v975_v51 = vpop.f32.mrf.mxu3  ;;  %v3958_v63 = vor.u32 %v4418_v48, %v3957_v47  ;;  %v3998_v54 = vld [vmem:[%s4522_s17 + $0x194] sm:$0xf]  ;;  %v4019_v46 = vor.u32 %v4433_v49, %v4018_v36  ;;  %v4428_v47 = vld [vmem:[%s4522_s17 + $0x198] sm:$0xf]  ;;  %v4403_v56 = vld [vmem:[%s4522_s17 + $0x158] sm:$0xf0]  ;;  %v3886_v17 = vor.u32 %v4400_v7, %v3885_v21 }
 0x101   : > { %v4000_v48 = vld [vmem:[%s4522_s17 + $0x1d0] sm:$0xf0]  ;;  %v4430_v51 = vld [vmem:[%s4522_s17 + $0x1d4] sm:$0xf0]  ;;  %v4422_v12 = vld [vmem:[%s4522_s17 + $0xa8] sm:$0xf] }
 0x102   : > { %2179 = vmatpush.bf16.msrb.mxu0 %v3809_v25  ;;  %v4055_v25 = vor.u32 %v4442_v60, %v4054_v59  ;;  %v4003_v53 = vor.u32 %v4428_v47, %v4000_v48  ;;  %v4426_v60 = vld [vmem:[%s4522_s17 + $0x154] sm:$0xf0]  ;;  %v4462_v47 = vld [vmem:[%s4522_s17 + $0x338] sm:$0xf0]  ;;  %v4461_v48 = vld [vmem:[%s4522_s17 + $0x304] sm:$0xf] }
 0x103   : > { %2192 = vmatpush.bf16.msrb.mxu1 %v3813_v4  ;;  %2370 = vmatpush.bf16.msrb.mxu2 %v3902_v5  ;;  %v4438_v4 = vld [vmem:[%s4522_s17 + $0x334] sm:$0xf0]  ;;  %v4437_v5 = vld [vmem:[%s4522_s17 + $0x300] sm:$0xf] }
 0x104   : > { %2383 = vmatpush.bf16.msrb.mxu3 %v3906_v8  ;;  %v5132_v8 = vld [vmem:[%s5267_s1 + $0x28] sm:$0xf]  ;;  %v4035_v10 = vor.u32 %v4438_v4, %v4034_v3  ;;  %v4039_v11 = vor.u32 %v4437_v5, %v4036_v6  ;;  %v3898_v4 = vor.u32 %v4403_v56, %v3897_v55  ;;  %v2816_v7 = vld [vmem:[%s5268_s2] sm:$0xff] }
 0x106   : > { %2180 = vmatpush.bf16.msrb.mxu0 %v3797_v18  ;;  %v4434_v18 = vld [vmem:[%s4522_s17 + $0x288] sm:$0xf] }
 0x107   : > { %2193 = vmatpush.bf16.msrb.mxu1 %v3801_v32  ;;  %2371 = vmatpush.bf16.msrb.mxu2 %v3890_v20  ;;  %v4030_v32 = vld [vmem:[%s4522_s17 + $0x28c] sm:$0xf]  ;;  %v4436_v20 = vld [vmem:[%s4522_s17 + $0x2c4] sm:$0xf0]  ;;  %v4027_v24 = vor.u32 %v4434_v18, %v4024_v19  ;;  %v3873_v18 = vld [vmem:[%s4522_s17 + $0x30] sm:$0xf] }
 0x108   : > { %2384 = vmatpush.bf16.msrb.mxu3 %v3894_v26  ;;  %v3921_v26 = vld [vmem:[%s4522_s17 + $0x210] sm:$0xf]  ;;  %v4031_v30 = vor.u32 %v4436_v20, %v4030_v32  ;;  %v4397_v19 = vld [vmem:[%s4522_s17 + $0x68] sm:$0xf0]  ;;  %v3979_v20 = vor.u32 %v4422_v12, %v3976_v14  ;;  %v4487_v12 = vmov 0  }
 0x109   : > { %v3922_v39 = vor.u32 %v4409_v28, %v3921_v26  ;;  %v3964_v28 = vld [vmem:[%s4522_s17 + $0x68] sm:$0xf0]  ;;  %v3874_v49 = vor.u32 %v4397_v19, %v3873_v18  ;;  %4478 = vset.pattern.permute.xlu0 %v4487_v12  ;;  %v4453_v18 = vld [vmem:[%s4522_s17 + $0x1d0] sm:$0xf0]  ;;  %v4452_v19 = vld [vmem:[%s4522_s17 + $0x19c] sm:$0xf] }
 0x10a   : > { %2181 = vmatpush.bf16.msrb.mxu0 %v3785_v35  ;;  %2819 = vperm.xlu0 %4478, %v2816_v7  }
 0x10b   : > { %2194 = vmatpush.bf16.msrb.mxu1 %v3789_v37  ;;  %2372 = vmatpush.bf16.msrb.mxu2 %v3878_v38 }
 0x10c   : > { %2385 = vmatpush.bf16.msrb.mxu3 %v3882_v43  ;;  %v4015_v43 = vor.u32 %v4431_v33, %v4012_v34  ;;  %v4143_v33 = vld [vmem:[%s4522_s17 + $0x378] sm:$0xf]  ;;  %v4465_v34 = vld [vmem:[%s4522_s17 + $0x3b0] sm:$0xf0] }
 0x10e   : > { %2182 = vmatpush.bf16.msrb.mxu0 %v3773_v52  ;;  %v1151_v35 = vpop.f32.mrf.mxu0 }
 0x10f   : > { %2195 = vmatpush.bf16.msrb.mxu1 %v3777_v57  ;;  %2373 = vmatpush.bf16.msrb.mxu2 %v3866_v58  ;;  %v1181_v37 = vadd.f32 %v1151_v35, %v5074_v61  ;;  %v1164_v38 = vpop.f32.mrf.mxu1  ;;  %v4429_v61 = vld [vmem:[%s4522_s17 + $0x1cc] sm:$0xf0]  ;;  %v3986_v57 = vld [vmem:[%s4522_s17 + $0x11c] sm:$0xf]  ;;  %v4007_v58 = vor.u32 %v4430_v51, %v4006_v50  ;;  %v4133_v50 = vld [vmem:[%s4522_s17 + $0x33c] sm:$0xf0] }
 0x110   : > { %2386 = vmatpush.bf16.msrb.mxu3 %v3870_v62  ;;  %v5156_v40 = vadd.f32 %v1164_v38, %v5091_v27  ;;  %v3910_v27 = vor.u32 %v4406_v45, %v3909_v44  ;;  %v3999_v52 = vor.u32 %v4429_v61, %v3998_v54  ;;  %v4425_v62 = vld [vmem:[%s4522_s17 + $0x120] sm:$0xf]  ;;  %v4464_v35 = vld [vmem:[%s4522_s17 + $0x37c] sm:$0xf]  ;;  %v4144_v45 = vor.u32 %v4465_v34, %v4143_v33  ;;  %v4139_v51 = vld [vmem:[%s4522_s17 + $0x308] sm:$0xf] }
 0x111   : > { %2183 = vmatmul.bf16.vlgmr.msrb.gmra.mxu0 %v5053_v23  ;;  %v4151_v38 = vld [vmem:[%s4522_s17 + $0x380] sm:$0xf]  ;;  %v4136_v55 = vor.u32 %v4461_v48, %v4133_v50  ;;  %v4451_v33 = vld [vmem:[%s4522_s17 + $0x160] sm:$0xf0]  ;;  %v4059_v50 = vld [vmem:[%s4522_s17 + $0x30] sm:$0xf] }
 0x112   : > { %2392 = vmatpush.bf16.msra.mxu0 %v3958_v63  ;;  %2196 = vmatmul.bf16.vlgmr.msrb.gmra.mxu1 %v5053_v23  ;;  %v4010_v23 = vld [vmem:[%s4522_s17 + $0x20c] sm:$0xf]  ;;  %v3988_v63 = vld [vmem:[%s4522_s17 + $0x158] sm:$0xf0]  ;;  %v4131_v61 = vld [vmem:[%s4522_s17 + $0x300] sm:$0xf] }
 0x113   : > { %2570 = vmatpush.bf16.msra.mxu1 %v4047_v13  ;;  %2583 = vmatpush.bf16.msra.mxu2 %v4051_v0  ;;  %v4011_v41 = vor.u32 %v4432_v31, %v4010_v23  ;;  %v3991_v6 = vor.u32 %v4425_v62, %v3988_v63  ;;  %v3970_v23 = vld [vmem:[%s4522_s17 + $0x34] sm:$0xf]  ;;  %v4127_v62 = vld [vmem:[%s4522_s17 + $0x290] sm:$0xf]  ;;  %v4460_v63 = vld [vmem:[%s4522_s17 + $0x2c8] sm:$0xf0] }
 0x114   : > { %2596 = vmatpush.bf16.msra.mxu3 %v4055_v25  ;;  %2374 = vmatmul.bf16.vlgmr.msrb.gmra.mxu2 %v5132_v8 }
 0x115   : > { %2387 = vmatmul.bf16.vlgmr.msrb.gmra.mxu3 %v5132_v8 }
 0x116   : > { %2393 = vmatpush.bf16.msra.mxu0 %v3946_v9  ;;  %v1153_v3 = vpop.f32.mrf.mxu0  ;;  %v3974_v9 = vld [vmem:[%s4522_s17 + $0xa4] sm:$0xf] }
 0x117   : > { %2571 = vmatpush.bf16.msra.mxu1 %v4035_v10  ;;  %2584 = vmatpush.bf16.msra.mxu2 %v4039_v11  ;;  %v1177_v59 = vpop.f32.mrf.mxu2  ;;  %v1166_v5 = vpop.f32.mrf.mxu1  ;;  %v3995_v10 = vor.u32 %v4427_v2, %v3994_v1  ;;  %v4423_v11 = vld [vmem:[%s4522_s17 + $0xdc] sm:$0xf0]  ;;  %v4128_v2 = vor.u32 %v4460_v63, %v4127_v62  ;;  %v4107_v3 = vld [vmem:[%s4522_s17 + $0x210] sm:$0xf] }
 0x118   : > { %2597 = vmatpush.bf16.msra.mxu3 %v4043_v16  ;;  %v5173_v13 = vadd.f32 %v1177_v59, %v5095_v29  ;;  %v1355_v0 = vpop.f32.mrf.mxu3  ;;  %v3987_v29 = vor.u32 %v4426_v60, %v3986_v57  ;;  %v4424_v16 = vld [vmem:[%s4522_s17 + $0xe4] sm:$0xf0]  ;;  %v3975_v32 = vor.u32 %v4423_v11, %v3974_v9  ;;  %v4458_v59 = vld [vmem:[%s4522_s17 + $0x28c] sm:$0xf]  ;;  %v4455_v5 = vld [vmem:[%s4522_s17 + $0x214] sm:$0xf] }
 0x119   : > { %v5177_v25 = vadd.f32 %v1355_v0, %v1181_v37  ;;  %v3983_v26 = vor.u32 %v4424_v16, %v3982_v15  ;;  %v4145_v37 = vld [vmem:[%s4522_s17 + $0x3b4] sm:$0xf0]  ;;  %v4119_v57 = vld [vmem:[%s4522_s17 + $0x288] sm:$0xf]  ;;  %v4056_v62 = vld [vmem:[%s5267_s1 + $0x30] sm:$0xf] }
 0x11a   : > { %2394 = vmatpush.bf16.msra.mxu0 %v3934_v22  ;;  %v3962_v22 = vld [vmem:[%s4522_s17 + $0x2c] sm:$0xf]  ;;  %v4148_v54 = vor.u32 %v4464_v35, %v4145_v37  ;;  %v4121_v60 = vld [vmem:[%s4522_s17 + $0x2c4] sm:$0xf0] }
 0x11b   : > { %2572 = vmatpush.bf16.msra.mxu1 %v4023_v42  ;;  %2585 = vmatpush.bf16.msra.mxu2 %v4027_v24  ;;  %v4420_v42 = vld [vmem:[%s4522_s17 + $0x64] sm:$0xf0]  ;;  %v4419_v24 = vld [vmem:[%s4522_s17 + $0x30] sm:$0xf]  ;;  %v4124_v1 = vor.u32 %v4458_v59, %v4121_v60 }
 0x11c   : > { %2598 = vmatpush.bf16.msra.mxu3 %v4031_v30  ;;  %v4421_v30 = vld [vmem:[%s4522_s17 + $0x6c] sm:$0xf0] }
 0x11d   : > { %v3971_v44 = vor.u32 %v4421_v30, %v3970_v23  ;;  %v4085_v30 = vld [vmem:[%s4522_s17 + $0x15c] sm:$0xf0] }
 0x11e   : > { %2395 = vmatpush.bf16.msra.mxu0 %v3922_v39  ;;  %v4466_v39 = vld [vmem:[%s4522_s17 + $0x3b8] sm:$0xf0] }
 0x11f   : > { %2573 = vmatpush.bf16.msra.mxu1 %v4011_v41  ;;  %2586 = vmatpush.bf16.msra.mxu2 %v4015_v43  ;;  %v1179_v31 = vpop.f32.mrf.mxu2  ;;  %v3963_v41 = vor.u32 %v4420_v42, %v3962_v22  ;;  %v3967_v43 = vor.u32 %v4419_v24, %v3964_v28  ;;  %v4083_v24 = vld [vmem:[%s4522_s17 + $0x120] sm:$0xf]  ;;  %v4449_v28 = vld [vmem:[%s4522_s17 + $0x124] sm:$0xf] }
 0x120   : > { %2599 = vmatpush.bf16.msra.mxu3 %v4019_v46  ;;  %v1357_v36 = vpop.f32.mrf.mxu3  ;;  %v4152_v46 = vor.u32 %v4466_v39, %v4151_v38  ;;  %v4091_v31 = vld [vmem:[%s4522_s17 + $0x128] sm:$0xf]  ;;  %v4088_v39 = vor.u32 %v4449_v28, %v4085_v30 }
 0x122   : > { %2396 = vmatpush.bf16.msra.mxu0 %v3910_v27  ;;  %v4463_v27 = vld [vmem:[%s4522_s17 + $0x340] sm:$0xf0] }
 0x123   : > { %2574 = vmatpush.bf16.msra.mxu1 %v3999_v52  ;;  %2587 = vmatpush.bf16.msra.mxu2 %v4003_v53  ;;  %v3959_v52 = vld [vmem:[%s5267_s1 + $0x2c] sm:$0xf]  ;;  %v4132_v53 = vor.u32 %v4462_v47, %v4131_v61  ;;  %v4140_v56 = vor.u32 %v4463_v27, %v4139_v51  ;;  %v4443_v27 = vld [vmem:[%s4522_s17 + $0x34] sm:$0xf] }
 0x124   : > { %2600 = vmatpush.bf16.msra.mxu3 %v4007_v58  ;;  %v4459_v58 = vld [vmem:[%s4522_s17 + $0x2c0] sm:$0xf0]  ;;  %v4444_v51 = vld [vmem:[%s4522_s17 + $0x68] sm:$0xf0] }
 0x125   : > { %v4120_v0 = vor.u32 %v4459_v58, %v4119_v57  ;;  %v4060_v58 = vor.u32 %v4444_v51, %v4059_v50 }
 0x126   : > { %2397 = vmatpush.bf16.msra.mxu0 %v3898_v4  ;;  %v4456_v4 = vld [vmem:[%s4522_s17 + $0x248] sm:$0xf0] }
 0x127   : > { %2575 = vmatpush.bf16.msra.mxu1 %v3987_v29  ;;  %2588 = vmatpush.bf16.msra.mxu2 %v3991_v6  ;;  %v4109_v29 = vld [vmem:[%s4522_s17 + $0x24c] sm:$0xf0]  ;;  %v4457_v6 = vld [vmem:[%s4522_s17 + $0x250] sm:$0xf0]  ;;  %v4108_v11 = vor.u32 %v4456_v4, %v4107_v3 }
 0x128   : > { %2601 = vmatpush.bf16.msra.mxu3 %v3995_v10  ;;  %v4112_v15 = vor.u32 %v4455_v5, %v4109_v29 }
 0x12a   : > { %2398 = vmatpush.bf16.msra.mxu0 %v3886_v17  ;;  %v4095_v17 = vld [vmem:[%s4522_s17 + $0x198] sm:$0xf] }
 0x12b   : > { %2576 = vmatpush.bf16.msra.mxu1 %v3975_v32  ;;  %2589 = vmatpush.bf16.msra.mxu2 %v3979_v20  ;;  %v4103_v32 = vld [vmem:[%s4522_s17 + $0x1a0] sm:$0xf]  ;;  %v4454_v20 = vld [vmem:[%s4522_s17 + $0x1d8] sm:$0xf0]  ;;  %v4096_v22 = vor.u32 %v4453_v18, %v4095_v17 }
 0x12c   : > { %2602 = vmatpush.bf16.msra.mxu3 %v3983_v26  ;;  %v4104_v42 = vor.u32 %v4454_v20, %v4103_v32  ;;  %v4450_v26 = vld [vmem:[%s4522_s17 + $0x158] sm:$0xf0] }
 0x12d   : > { %v4084_v37 = vor.u32 %v4450_v26, %v4083_v24 }
 0x12e   : > { %2399 = vmatpush.bf16.msra.mxu0 %v3874_v49  ;;  %v1368_v21 = vpop.f32.mrf.mxu0 }
 0x12f   : > { %2577 = vmatpush.bf16.msra.mxu1 %v3963_v41  ;;  %2590 = vmatpush.bf16.msra.mxu2 %v3967_v43  ;;  %v1386_v9 = vadd.f32 %v1368_v21, %v5156_v40  ;;  %v1381_v10 = vpop.f32.mrf.mxu1  ;;  %v4097_v40 = vld [vmem:[%s4522_s17 + $0x1d4] sm:$0xf0]  ;;  %v4092_v41 = vor.u32 %v4451_v33, %v4091_v31  ;;  %v4071_v43 = vld [vmem:[%s4522_s17 + $0xa8] sm:$0xf] }
 0x130   : > { %2603 = vmatpush.bf16.msra.mxu3 %v3971_v44  ;;  %v5228_v14 = vadd.f32 %v1381_v10, %v5173_v13  ;;  %v4100_v13 = vor.u32 %v4452_v19, %v4097_v40  ;;  %v4447_v44 = vld [vmem:[%s4522_s17 + $0xe0] sm:$0xf0] }
 0x131   : > { %2400 = vmatmul.bf16.vlgmr.msra.gmra.mxu0 %v5132_v8  ;;  %v4115_v8 = vld [vmem:[%s4522_s17 + $0x218] sm:$0xf]  ;;  %v4072_v61 = vor.u32 %v4447_v44, %v4071_v43 }
 0x132   : > { %2774 = vmatpush.bf16.msrb.mxu0 %v4144_v45  ;;  %2578 = vmatmul.bf16.vlgmr.msra.gmra.mxu1 %v3959_v52  ;;  %v4116_v16 = vor.u32 %v4457_v6, %v4115_v8  ;;  %v4073_v45 = vld [vmem:[%s4522_s17 + $0xe4] sm:$0xf0] }
 0x133   : > { %2787 = vmatpush.bf16.msrb.mxu1 %v4148_v54  ;;  %2800 = vmatpush.bf16.msrb.mxu2 %v4152_v46  ;;  %v4079_v54 = vld [vmem:[%s4522_s17 + $0xb0] sm:$0xf]  ;;  %v4448_v46 = vld [vmem:[%s4522_s17 + $0xe8] sm:$0xf0] }
 0x134   : > { %2591 = vmatmul.bf16.vlgmr.msra.gmra.mxu2 %v3959_v52  ;;  %2604 = vmatmul.bf16.vlgmr.msra.gmra.mxu3 %v3959_v52  ;;  %v4080_v48 = vor.u32 %v4448_v46, %v4079_v54  ;;  %v4061_v52 = vld [vmem:[%s4522_s17 + $0x6c] sm:$0xf0] }
 0x135   : > { %v4064_v59 = vor.u32 %v4443_v27, %v4061_v52 }
 0x136   : > { %2775 = vmatpush.bf16.msrb.mxu0 %v4132_v53  ;;  %v1370_v36 = vpop.f32.mrf.mxu0  ;;  %v4067_v53 = vld [vmem:[%s4522_s17 + $0x38] sm:$0xf] }
 0x137   : > { %2788 = vmatpush.bf16.msrb.mxu1 %v4136_v55  ;;  %2801 = vmatpush.bf16.msrb.mxu2 %v4140_v56  ;;  %v1559_v23 = vpop.f32.mrf.mxu2  ;;  %v1383_v38 = vpop.f32.mrf.mxu1  ;;  %v4445_v55 = vld [vmem:[%s4522_s17 + $0x70] sm:$0xf0] }
 0x138   : > { %v1589_v34 = vadd.f32 %v1559_v23, %v5177_v25  ;;  %v1572_v35 = vpop.f32.mrf.mxu3  ;;  %v4446_v25 = vld [vmem:[%s4522_s17 + $0xac] sm:$0xf]  ;;  %v4068_v60 = vor.u32 %v4445_v55, %v4067_v53  ;;  %s4468_s17 = smul.u32 24, %s5271_s13 }
 0x139   : > { %v1590_v49 = vadd.f32 %v1572_v35, %v1386_v9  ;;  %v4076_v47 = vor.u32 %v4446_v25, %v4073_v45 }
 0x13a   : > { %2776 = vmatpush.bf16.msrb.mxu0 %v4120_v0  ;;  %s170_s24 = scalar_lea.vmem %s5269_s3, %s4468_s17 }
 0x13b   : > { %2789 = vmatpush.bf16.msrb.mxu1 %v4124_v1  ;;  %2802 = vmatpush.bf16.msrb.mxu2 %v4128_v2 }
 0x13e   : > { %2777 = vmatpush.bf16.msrb.mxu0 %v4108_v11 }
 0x13f   : > { %2790 = vmatpush.bf16.msrb.mxu1 %v4112_v15  ;;  %2803 = vmatpush.bf16.msrb.mxu2 %v4116_v16  ;;  %v1561_v56 = vpop.f32.mrf.mxu2 }
 0x140   : > { %v1574_v57 = vpop.f32.mrf.mxu3 }
 0x142   : > { %2778 = vmatpush.bf16.msrb.mxu0 %v4096_v22 }
 0x143   : > { %2791 = vmatpush.bf16.msrb.mxu1 %v4100_v13  ;;  %2804 = vmatpush.bf16.msrb.mxu2 %v4104_v42 }
 0x146   : > { %2779 = vmatpush.bf16.msrb.mxu0 %v4084_v37 }
 0x147   : > { %2792 = vmatpush.bf16.msrb.mxu1 %v4088_v39  ;;  %2805 = vmatpush.bf16.msrb.mxu2 %v4092_v41 }
 0x14a   : > { %2780 = vmatpush.bf16.msrb.mxu0 %v4072_v61 }
 0x14b   : > { %2793 = vmatpush.bf16.msrb.mxu1 %v4076_v47  ;;  %2806 = vmatpush.bf16.msrb.mxu2 %v4080_v48 }
 0x14e   : > { %2781 = vmatpush.bf16.msrb.mxu0 %v4060_v58  ;;  %v1585_v63 = vpop.f32.mrf.mxu0 }
 0x14f   : > { %2794 = vmatpush.bf16.msrb.mxu1 %v4064_v59  ;;  %2807 = vmatpush.bf16.msrb.mxu2 %v4068_v60  ;;  %v1591_v0 = vadd.f32 %v1585_v63, %v5228_v14  ;;  %v1763_v1 = vpop.f32.mrf.mxu1 }
 0x150   : > { %v1793_v2 = vadd.f32 %v1763_v1, %v1589_v34 }
 0x151   : > { %2782 = vmatmul.bf16.vlgmr.msrb.gmra.mxu0 %v4056_v62 }
 0x152   : > { %2795 = vmatmul.bf16.vlgmr.msrb.gmra.mxu1 %v4056_v62  ;;  %2808 = vmatmul.bf16.vlgmr.msrb.gmra.mxu2 %v4056_v62 }
 0x156   : > { %v1587_v29 = vpop.f32.mrf.mxu0 }
 0x157   : > { %v1776_v3 = vpop.f32.mrf.mxu2  ;;  %v1765_v6 = vpop.f32.mrf.mxu1 }
 0x158   : > { %v1794_v4 = vadd.f32 %v1776_v3, %v1590_v49  ;;  %v1789_v5 = vpop.f32.mrf.mxu3 }
 0x159   : > { %v1795_v8 = vadd.f32 %v1789_v5, %v1591_v0 }
 0x15f   : > { %v1778_v21 = vpop.f32.mrf.mxu2 }
 0x160   : > { %v1791_v7 = vpop.f32.mrf.mxu3 }
 0x16e   : > { %v1967_v9 = vpop.f32.mrf.mxu0 }
 0x16f   : > { %v1997_v10 = vadd.f32 %v1967_v9, %v1793_v2  ;;  %v1980_v11 = vpop.f32.mrf.mxu1 }
 0x170   : > { %v1998_v12 = vadd.f32 %v1980_v11, %v1794_v4 }
 0x176   : > { %v1969_v18 = vpop.f32.mrf.mxu0 }
 0x177   : > { %v1993_v15 = vpop.f32.mrf.mxu2  ;;  %v1982_v14 = vpop.f32.mrf.mxu1 }
 0x178   : > { %v1999_v16 = vadd.f32 %v1993_v15, %v1795_v8  ;;  %v2171_v17 = vpop.f32.mrf.mxu3 }
 0x179   : > { %v2201_v19 = vadd.f32 %v2171_v17, %v1997_v10 }
 0x17c   : > { %v2820_v45 = vpop.permute.xlu0 %2819 }
 0x17f   : > { %v1995_v40 = vpop.f32.mrf.mxu2 }
 0x180   : > { %v2173_v32 = vpop.f32.mrf.mxu3 }
 0x18e   : > { %v2184_v20 = vpop.f32.mrf.mxu0 }
 0x18f   : > { %v2197_v22 = vpop.f32.mrf.mxu1  ;;  %v2202_v38 = vadd.f32 %v2184_v20, %v1998_v12 }
 0x190   : > { %v2203_v61 = vadd.f32 %v2197_v22, %v1999_v16 }
 0x196   : > { %v2186_v24 = vpop.f32.mrf.mxu0 }
 0x197   : > { %v2375_v13 = vpop.f32.mrf.mxu2  ;;  %v2199_v26 = vpop.f32.mrf.mxu1 }
 0x198   : > { %v2388_v42 = vpop.f32.mrf.mxu3  ;;  %v2405_v39 = vadd.f32 %v2375_v13, %v2201_v19 }
 0x199   : > { %v2406_v41 = vadd.f32 %v2388_v42, %v2202_v38 }
 0x19f   : > { %v2377_v28 = vpop.f32.mrf.mxu2 }
 0x1a0   : > { %v2390_v23 = vpop.f32.mrf.mxu3 }
 0x1ae   : > { %v2401_v30 = vpop.f32.mrf.mxu0 }
 0x1af   : > { %v2579_v31 = vpop.f32.mrf.mxu1  ;;  %v2407_v50 = vadd.f32 %v2401_v30, %v2203_v61 }
 0x1b0   : > { %v2609_v43 = vadd.f32 %v2579_v31, %v2405_v39 }
 0x1b6   : > { %v2403_v35 = vpop.f32.mrf.mxu0 }
 0x1b7   : > { %v2592_v33 = vpop.f32.mrf.mxu2  ;;  %v2605_v34 = vpop.f32.mrf.mxu3 }
 0x1b8   : > { %v2581_v36 = vpop.f32.mrf.mxu1  ;;  %v2610_v44 = vadd.f32 %v2592_v33, %v2406_v41  ;;  %v2611_v52 = vadd.f32 %v2605_v34, %v2407_v50 }
 0x1bf   : > { %v2594_v49 = vpop.f32.mrf.mxu2  ;;  %v2607_v37 = vpop.f32.mrf.mxu3 }
 0x1ce   : > { %v2783_v25 = vpop.f32.mrf.mxu0 }
 0x1cf   : > { %v2813_v54 = vadd.f32 %v2783_v25, %v2609_v43  ;;  %v2796_v46 = vpop.f32.mrf.mxu1 }
 0x1d0   : > { %v2814_v47 = vadd.f32 %v2796_v46, %v2610_v44 }
 0x1d1   : > { %v2822_v48 = vadd.f32 %v2820_v45, %v2813_v54 }
 0x1d2   : > { %v2823_v51 = vadd.f32 %v2820_v45, %v2814_v47 }
 0x1d3   : > { %v2825_v27 = vmax.f32 %v2822_v48, 0.0 }
 0x1d4   : > { %v2826_v53 = vmax.f32 %v2823_v51, 0.0 }
 0x1d5   : > { %2828 = vst [vmem:[%s170_s24] sm:$0xff] %v2825_v27  ;;  %v2809_v55 = vpop.f32.mrf.mxu2 }
 0x1d6   : > { %2829 = vst [vmem:[%s170_s24 + $0x8] sm:$0xff] %v2826_v53  ;;  %v2815_v56 = vadd.f32 %v2809_v55, %v2611_v52  ;;  %v2785_v57 = vpop.f32.mrf.mxu0 }
 0x1d7   : > { %v2798_v58 = vpop.f32.mrf.mxu1 }
 0x1d8   : > { %v2824_v59 = vadd.f32 %v2820_v45, %v2815_v56 }
 0x1da   : > { %v2827_v60 = vmax.f32 %v2824_v59, 0.0 }
 0x1dc   : > { %2830 = vst [vmem:[%s170_s24 + $0x10] sm:$0xff] %v2827_v60 }
 0x1dd   : > { %v2811_v62 = vpop.f32.mrf.mxu2 }
 0x1de PF: > { %s13_s12 = sadd.s32 1, %s4485_s12  }
 0x1df   : > { %p10_p4 = scmp.ge.s32.totalorder %s13_s12, 4  }
 0x1e1   :  { %12 = sbr.rel (!%p10_p4) target bundleno = 1 (0x1), region = 74 }

</bundles_post_ra>
